<compile_context>
chip_gen: v5e
topology: v5e:2x2
jax: 0.10.0
libtpu: 0.0.40
codegen_flags: <defaults>
</compile_context>

<pallas_src>
import functools

import jax
import jax.numpy as jnp
from jax import lax
from jax.experimental import pallas as pl
from jax.experimental.pallas import tpu as pltpu


# ---------------------------------------------------------------------------
# Fused Pallas kernel: full multi-layer LSTM recurrence, single invocation.
# ---------------------------------------------------------------------------
def _make_encoder_lstm_kernel(n_layers, S, Bp, H, unroll):
    """Kernel signature:
        kernel(z0, whh_0..whh_{L-1}, wih_1..wih_{L-1}, b_1..b_{L-1},
               h_out, c_out, [y_sc, z_sc])
    z0 is the precomputed layer-0 input projection, 2D (S*Bp, 4H), with the
    g-gate columns pre-scaled by 2 (tanh-as-sigmoid trick).
    """
    fourH = 4 * H

    def kernel(*refs):
        idx = 0
        z0_ref = refs[idx]; idx += 1
        whh_refs = refs[idx:idx + n_layers]; idx += n_layers
        wih_refs = refs[idx:idx + n_layers - 1]; idx += n_layers - 1
        b_refs = refs[idx:idx + n_layers - 1]; idx += n_layers - 1
        h_out_ref = refs[idx]; idx += 1
        c_out_ref = refs[idx]; idx += 1
        if n_layers > 1:
            y_sc = refs[idx]; idx += 1          # (S*Bp, H)  inter-layer activations
            z_sc = refs[idx]; idx += 1          # (S*Bp, 4H) layer-l pre-activations

        def run_layer(layer, z_src_ref, write_y):
            whh = whh_refs[layer][...]          # (H, 4H), loaded once per layer
            mm_dtype = whh.dtype
            h0 = jnp.zeros((Bp, H), jnp.float32)
            c0 = jnp.zeros((Bp, H), jnp.float32)

            def step(t, carry):
                h, c = carry
                row = pl.multiple_of(t * Bp, Bp)          # 8-aligned sublane offset
                # Only the hidden-state matmul is on the serial path.
                z = z_src_ref[pl.ds(row, Bp), :] + jnp.dot(
                    h.astype(mm_dtype), whh, preferred_element_type=jnp.float32)
                # ONE full-width sigmoid (EUP); g recovered with VPU ops only
                # because its pre-activation columns were pre-scaled by 2:
                #   tanh(x) = 2*sigmoid(2x) - 1
                zs = jax.nn.sigmoid(z)                     # (Bp, 4H)
                i = zs[:, 0 * H:1 * H]
                f = zs[:, 1 * H:2 * H]
                g = 2.0 * zs[:, 2 * H:3 * H] - 1.0
                o = zs[:, 3 * H:4 * H]
                c_new = f * c + i * g
                h_new = o * jnp.tanh(c_new)
                if write_y:
                    y_sc[pl.ds(row, Bp), :] = h_new.astype(y_sc.dtype)
                return h_new, c_new

            h_n, c_n = lax.fori_loop(0, S, step, (h0, c0), unroll=unroll)
            # Final states written exactly once per layer.
            h_out_ref[layer] = h_n
            c_out_ref[layer] = c_n

        # Layer 0 reads the hoisted (XLA-computed) input projection.
        run_layer(0, z0_ref, write_y=(n_layers > 1))

        for layer in range(1, n_layers):
            # Per-layer input projection: ONE GEMM over all S*Bp rows, entirely
            # in VMEM; no reshape/relayout of the activation buffer.
            wih = wih_refs[layer - 1][...]                 # (H, 4H)
            z_sc[...] = (jnp.dot(y_sc[...], wih,
                                 preferred_element_type=jnp.float32)
                         + b_refs[layer - 1][...])         # (S*Bp, 4H)
            run_layer(layer, z_sc, write_y=(layer < n_layers - 1))

    return kernel


def encoder_lstm_pallas(z0_2d, whh_list, wih_list, b_list, *, seq_len,
                        batch_padded):
    """z0_2d: (S*Bp, 4H) layer-0 pre-activations. Returns (hidden, cell): (L,Bp,H)."""
    S, Bp = seq_len, batch_padded
    fourH = z0_2d.shape[1]
    H = fourH // 4
    n_layers = len(whh_list)
    mm_dtype = whh_list[0].dtype
    mm_isz = int(jnp.dtype(mm_dtype).itemsize)

    scratch_shapes = []
    if n_layers > 1:
        scratch_shapes = [
            pltpu.VMEM((S * Bp, H), mm_dtype),        # inter-layer y (matmul dtype)
            pltpu.VMEM((S * Bp, fourH), jnp.float32),  # layer-l pre-activations
        ]

    n_inputs = 1 + n_layers + 2 * (n_layers - 1)
    vmem_spec = pl.BlockSpec(memory_space=pltpu.MemorySpace.VMEM)

    # --- VMEM budget: everything is resident once (grid=(), no blocking). ---
    weights_bytes = sum(int(w.size) * int(jnp.dtype(w.dtype).itemsize)
                        for w in (list(whh_list) + list(wih_list) + list(b_list)))
    out_bytes = 2 * n_layers * Bp * H * 4
    scratch_bytes = (S * Bp * H * mm_isz + S * Bp * fourH * 4) if n_layers > 1 else 0
    resident = int(z0_2d.size) * int(jnp.dtype(z0_2d.dtype).itemsize) \
        + weights_bytes + out_bytes + scratch_bytes
    vmem_limit = int(2 * resident + (8 << 20))

    # --- Advisory cost estimate for XLA scheduling around the custom call. ---
    flops = int(2 * S * Bp * H * fourH * (2 * n_layers - 1))
    transcendentals = int(n_layers * S * Bp * (fourH + H))
    bytes_accessed = int(resident)

    unroll = S if S <= 8 else 8   # bounded unroll: LLO visibility w/o vreg spills

    return pl.pallas_call(
        _make_encoder_lstm_kernel(n_layers, S, Bp, H, unroll),
        out_shape=(jax.ShapeDtypeStruct((n_layers, Bp, H), jnp.float32),
                   jax.ShapeDtypeStruct((n_layers, Bp, H), jnp.float32)),
        in_specs=[vmem_spec] * n_inputs,
        out_specs=(vmem_spec, vmem_spec),
        scratch_shapes=scratch_shapes,
        compiler_params=pltpu.CompilerParams(vmem_limit_bytes=vmem_limit),
        cost_estimate=pl.CostEstimate(flops=flops,
                                      transcendentals=transcendentals,
                                      bytes_accessed=bytes_accessed),
    )(z0_2d, *whh_list, *wih_list, *b_list)


# ---------------------------------------------------------------------------
# Encoder: embedding (glue, plain-JAX gather) + fused LSTM stack (Pallas)
# ---------------------------------------------------------------------------
def init_encoder_params(key, input_dim, emb_dim, hid_dim, n_layers):
    params = {}
    k_emb, key = jax.random.split(key)
    params["embedding"] = jax.random.normal(k_emb, (input_dim, emb_dim),
                                            dtype=jnp.float32)
    bound = 1.0 / jnp.sqrt(jnp.float32(hid_dim))
    layers = []
    for layer in range(n_layers):
        in_dim = emb_dim if layer == 0 else hid_dim
        k1, k2, k3, k4, key = jax.random.split(key, 5)
        w_ih = jax.random.uniform(k1, (4 * hid_dim, in_dim),
                                  minval=-bound, maxval=bound, dtype=jnp.float32)
        w_hh = jax.random.uniform(k2, (4 * hid_dim, hid_dim),
                                  minval=-bound, maxval=bound, dtype=jnp.float32)
        b_ih = jax.random.uniform(k3, (4 * hid_dim,),
                                  minval=-bound, maxval=bound, dtype=jnp.float32)
        b_hh = jax.random.uniform(k4, (4 * hid_dim,),
                                  minval=-bound, maxval=bound, dtype=jnp.float32)
        layers.append({
            "w_ih_t": w_ih.T,                          # (in_dim, 4H)
            "w_hh_t": w_hh.T,                          # (H, 4H)
            "bias": (b_ih + b_hh).reshape(1, -1),      # (1, 4H)
        })
    params["lstm"] = layers
    return params


def _g_gate_scale(H, dtype=jnp.float32):
    """Columns [2H:3H] (the g gate) scaled by 2 for the tanh-as-sigmoid trick."""
    return jnp.concatenate([jnp.ones((2 * H,), dtype),
                            jnp.full((H,), 2.0, dtype),
                            jnp.ones((H,), dtype)])


@functools.partial(jax.jit, static_argnames=("use_bf16_matmul",))
def encoder_forward(params, src, use_bf16_matmul=False):
    """src: (S, B) int32 token ids. Returns (hidden, cell): (n_layers, B, H)."""
    mm_dtype = jnp.bfloat16 if use_bf16_matmul else jnp.float32

    # Embedding lookup (glue) + dropout (identity in eval mode).
    embedded = jnp.take(params["embedding"], src, axis=0)     # (S, B, E)
    S, B, E = embedded.shape

    layers = params["lstm"]
    H = layers[0]["w_hh_t"].shape[0]
    Bp = ((B + 7) // 8) * 8        # pad batch to a sublane multiple inside kernel

    gscale = _g_gate_scale(H)      # consistent g-gate pre-scaling everywhere

    # Hoisted layer-0 input projection: one well-shaped GEMM over S*B rows.
    w_ih0 = (layers[0]["w_ih_t"] * gscale).astype(mm_dtype)
    b0 = layers[0]["bias"] * gscale
    z0 = (jnp.dot(embedded.reshape(S * B, E).astype(mm_dtype), w_ih0,
                  preferred_element_type=jnp.float32)
          + b0).reshape(S, B, 4 * H)
    if Bp != B:
        # Zero-pad the batch dim: pad rows stay finite and are never read back.
        z0 = jnp.pad(z0, ((0, 0), (0, Bp - B), (0, 0)))
    z0_2d = z0.reshape(S * Bp, 4 * H)

    whh_list = [(lp["w_hh_t"] * gscale).astype(mm_dtype) for lp in layers]
    wih_list = [(lp["w_ih_t"] * gscale).astype(mm_dtype) for lp in layers[1:]]
    b_list = [lp["bias"] * gscale for lp in layers[1:]]

    hidden, cell = encoder_lstm_pallas(z0_2d, whh_list, wih_list, b_list,
                                       seq_len=S, batch_padded=Bp)
    return hidden[:, :B, :], cell[:, :B, :]


# ---------------------------------------------------------------------------
# Pure-JAX reference (lax.scan LSTM, unscaled weights) for a correctness check.
# ---------------------------------------------------------------------------
def encoder_forward_ref(params, src):
    embedded = jnp.take(params["embedding"], src, axis=0)
    x = embedded
    hs, cs = [], []
    for lp in params["lstm"]:
        H = lp["w_hh_t"].shape[0]
        B = x.shape[1]

        def step(carry, xt):
            h, c = carry
            z = xt @ lp["w_ih_t"] + h @ lp["w_hh_t"] + lp["bias"]
            i = jax.nn.sigmoid(z[:, 0 * H:1 * H])
            f = jax.nn.sigmoid(z[:, 1 * H:2 * H])
            g = jnp.tanh(z[:, 2 * H:3 * H])
            o = jax.nn.sigmoid(z[:, 3 * H:4 * H])
            c_new = f * c + i * g
            h_new = o * jnp.tanh(c_new)
            return (h_new, c_new), h_new

        init = (jnp.zeros((B, H), jnp.float32), jnp.zeros((B, H), jnp.float32))
        (h_n, c_n), y = lax.scan(step, init, x)
        hs.append(h_n)
        cs.append(c_n)
        x = y
    return jnp.stack(hs, 0), jnp.stack(cs, 0)


if __name__ == "__main__":
    # Small shapes consistent with the module's forward:
    INPUT_DIM = 50    # vocab size
    EMB_DIM = 16
    HID_DIM = 32
    N_LAYERS = 2
    SEQ_LEN = 8
    BATCH = 4

    key = jax.random.PRNGKey(0)
    k_params, k_src = jax.random.split(key)

    params = init_encoder_params(k_params, INPUT_DIM, EMB_DIM, HID_DIM, N_LAYERS)
    src = jax.random.randint(k_src, (SEQ_LEN, BATCH), 0, INPUT_DIM, dtype=jnp.int32)

    # f32 path (parity with the reference; tanh-as-sigmoid adds only ulp noise).
    hidden, cell = encoder_forward(params, src)
    jax.block_until_ready((hidden, cell))
    assert hidden.shape == (N_LAYERS, BATCH, HID_DIM)
    assert cell.shape == (N_LAYERS, BATCH, HID_DIM)

    h_ref, c_ref = encoder_forward_ref(params, src)
    assert jnp.allclose(hidden, h_ref, atol=1e-3, rtol=1e-3)
    assert jnp.allclose(cell, c_ref, atol=1e-3, rtol=1e-3)

    # bf16-MXU path (v6e/v7x perf lever); f32 gate math and state, loose check.
    hidden_bf, cell_bf = encoder_forward(params, src, use_bf16_matmul=True)
    jax.block_until_ready((hidden_bf, cell_bf))
    assert hidden_bf.shape == (N_LAYERS, BATCH, HID_DIM)
    assert jnp.allclose(hidden_bf, h_ref, atol=1e-1)
    assert jnp.allclose(cell_bf, c_ref, atol=1e-1)

    print("KERNEL_OK")
</pallas_src>

<mosaic_0001>
module attributes {stable_mosaic.version = 11 : i64} {
  func.func @kernel(%arg0: memref<64x128xf32, #tpu.memory_space<vmem>>, %arg1: memref<32x128xf32, #tpu.memory_space<vmem>>, %arg2: memref<32x128xf32, #tpu.memory_space<vmem>>, %arg3: memref<32x128xf32, #tpu.memory_space<vmem>>, %arg4: memref<1x128xf32, #tpu.memory_space<vmem>>, %arg5: memref<2x8x32xf32, #tpu.memory_space<vmem>>, %arg6: memref<2x8x32xf32, #tpu.memory_space<vmem>>, %arg7: memref<64x32xf32, #tpu.memory_space<vmem>>, %arg8: memref<64x128xf32, #tpu.memory_space<vmem>>) attributes {dimension_semantics = [], scalar_prefetch = 0 : i64, scratch_operands = 2 : i64, tpu.core_type = #tpu.core_type<tc>} {
    %c0 = arith.constant 0 : index
    %c0_0 = arith.constant 0 : index
    %0 = vector.load %arg1[%c0, %c0_0] : memref<32x128xf32, #tpu.memory_space<vmem>>, vector<32x128xf32>
    %cst = arith.constant 0.000000e+00 : f32
    %1 = vector.broadcast %cst : f32 to vector<8x32xf32>
    %cst_1 = arith.constant 0.000000e+00 : f32
    %2 = vector.broadcast %cst_1 : f32 to vector<8x32xf32>
    %c0_i32 = arith.constant 0 : i32
    %c8_i32 = arith.constant 8 : i32
    %3 = arith.muli %c0_i32, %c8_i32 : i32
    %4 = tpu.assume_multiple %3, 8 : i32
    %5 = arith.index_cast %4 : i32 to index
    %c0_2 = arith.constant 0 : index
    %6 = vector.load %arg0[%5, %c0_2] : memref<64x128xf32, #tpu.memory_space<vmem>>, vector<8x128xf32>
    %cst_3 = arith.constant dense<0.000000e+00> : vector<8x128xf32>
    %7 = tpu.matmul %1, %0, %cst_3 {dimension_numbers = #tpu.dot_dimension_numbers<[1], [0], [0], [1], [0, 0, 1, 1], [], []>} : vector<8x32xf32>, vector<32x128xf32>, vector<8x128xf32> -> vector<8x128xf32>
    %8 = arith.addf %6, %7 : vector<8x128xf32>
    %9 = arith.negf %8 : vector<8x128xf32>
    %10 = math.exp %9 : vector<8x128xf32>
    %cst_4 = arith.constant 1.000000e+00 : f32
    %11 = vector.broadcast %cst_4 : f32 to vector<8x128xf32>
    %12 = arith.addf %11, %10 : vector<8x128xf32>
    %13 = arith.divf %11, %12 : vector<8x128xf32>
    %14 = vector.extract_strided_slice %13 {offsets = [0, 0], sizes = [8, 32], strides = [1, 1]} : vector<8x128xf32> to vector<8x32xf32>
    %15 = vector.extract_strided_slice %13 {offsets = [0, 32], sizes = [8, 32], strides = [1, 1]} : vector<8x128xf32> to vector<8x32xf32>
    %16 = vector.extract_strided_slice %13 {offsets = [0, 64], sizes = [8, 32], strides = [1, 1]} : vector<8x128xf32> to vector<8x32xf32>
    %cst_5 = arith.constant 2.000000e+00 : f32
    %17 = vector.broadcast %cst_5 : f32 to vector<8x32xf32>
    %18 = arith.mulf %17, %16 : vector<8x32xf32>
    %cst_6 = arith.constant 1.000000e+00 : f32
    %19 = vector.broadcast %cst_6 : f32 to vector<8x32xf32>
    %20 = arith.subf %18, %19 : vector<8x32xf32>
    %21 = vector.extract_strided_slice %13 {offsets = [0, 96], sizes = [8, 32], strides = [1, 1]} : vector<8x128xf32> to vector<8x32xf32>
    %22 = arith.mulf %15, %2 : vector<8x32xf32>
    %23 = arith.mulf %14, %20 : vector<8x32xf32>
    %24 = arith.addf %22, %23 : vector<8x32xf32>
    %25 = math.tanh %24 : vector<8x32xf32>
    %26 = arith.mulf %21, %25 : vector<8x32xf32>
    %27 = arith.index_cast %4 : i32 to index
    %c0_7 = arith.constant 0 : index
    %28 = vector.load %arg7[%27, %c0_7] : memref<64x32xf32, #tpu.memory_space<vmem>>, vector<8x32xf32>
    tpu.vector_store %arg7[%27, %c0_7], %26 {strides = array<i32>} : memref<64x32xf32, #tpu.memory_space<vmem>>, vector<8x32xf32>,
    %c1_i32 = arith.constant 1 : i32
    %c8_i32_8 = arith.constant 8 : i32
    %29 = arith.muli %c1_i32, %c8_i32_8 : i32
    %30 = tpu.assume_multiple %29, 8 : i32
    %31 = arith.index_cast %30 : i32 to index
    %c0_9 = arith.constant 0 : index
    %32 = vector.load %arg0[%31, %c0_9] : memref<64x128xf32, #tpu.memory_space<vmem>>, vector<8x128xf32>
    %cst_10 = arith.constant dense<0.000000e+00> : vector<8x128xf32>
    %33 = tpu.matmul %26, %0, %cst_10 {dimension_numbers = #tpu.dot_dimension_numbers<[1], [0], [0], [1], [0, 0, 1, 1], [], []>} : vector<8x32xf32>, vector<32x128xf32>, vector<8x128xf32> -> vector<8x128xf32>
    %34 = arith.addf %32, %33 : vector<8x128xf32>
    %35 = arith.negf %34 : vector<8x128xf32>
    %36 = math.exp %35 : vector<8x128xf32>
    %cst_11 = arith.constant 1.000000e+00 : f32
    %37 = vector.broadcast %cst_11 : f32 to vector<8x128xf32>
    %38 = arith.addf %37, %36 : vector<8x128xf32>
    %39 = arith.divf %37, %38 : vector<8x128xf32>
    %40 = vector.extract_strided_slice %39 {offsets = [0, 0], sizes = [8, 32], strides = [1, 1]} : vector<8x128xf32> to vector<8x32xf32>
    %41 = vector.extract_strided_slice %39 {offsets = [0, 32], sizes = [8, 32], strides = [1, 1]} : vector<8x128xf32> to vector<8x32xf32>
    %42 = vector.extract_strided_slice %39 {offsets = [0, 64], sizes = [8, 32], strides = [1, 1]} : vector<8x128xf32> to vector<8x32xf32>
    %cst_12 = arith.constant 2.000000e+00 : f32
    %43 = vector.broadcast %cst_12 : f32 to vector<8x32xf32>
    %44 = arith.mulf %43, %42 : vector<8x32xf32>
    %cst_13 = arith.constant 1.000000e+00 : f32
    %45 = vector.broadcast %cst_13 : f32 to vector<8x32xf32>
    %46 = arith.subf %44, %45 : vector<8x32xf32>
    %47 = vector.extract_strided_slice %39 {offsets = [0, 96], sizes = [8, 32], strides = [1, 1]} : vector<8x128xf32> to vector<8x32xf32>
    %48 = arith.mulf %41, %24 : vector<8x32xf32>
    %49 = arith.mulf %40, %46 : vector<8x32xf32>
    %50 = arith.addf %48, %49 : vector<8x32xf32>
    %51 = math.tanh %50 : vector<8x32xf32>
    %52 = arith.mulf %47, %51 : vector<8x32xf32>
    %53 = arith.index_cast %30 : i32 to index
    %c0_14 = arith.constant 0 : index
    %54 = vector.load %arg7[%53, %c0_14] : memref<64x32xf32, #tpu.memory_space<vmem>>, vector<8x32xf32>
    tpu.vector_store %arg7[%53, %c0_14], %52 {strides = array<i32>} : memref<64x32xf32, #tpu.memory_space<vmem>>, vector<8x32xf32>,
    %c2_i32 = arith.constant 2 : i32
    %c8_i32_15 = arith.constant 8 : i32
    %55 = arith.muli %c2_i32, %c8_i32_15 : i32
    %56 = tpu.assume_multiple %55, 8 : i32
    %57 = arith.index_cast %56 : i32 to index
    %c0_16 = arith.constant 0 : index
    %58 = vector.load %arg0[%57, %c0_16] : memref<64x128xf32, #tpu.memory_space<vmem>>, vector<8x128xf32>
    %cst_17 = arith.constant dense<0.000000e+00> : vector<8x128xf32>
    %59 = tpu.matmul %52, %0, %cst_17 {dimension_numbers = #tpu.dot_dimension_numbers<[1], [0], [0], [1], [0, 0, 1, 1], [], []>} : vector<8x32xf32>, vector<32x128xf32>, vector<8x128xf32> -> vector<8x128xf32>
    %60 = arith.addf %58, %59 : vector<8x128xf32>
    %61 = arith.negf %60 : vector<8x128xf32>
    %62 = math.exp %61 : vector<8x128xf32>
    %cst_18 = arith.constant 1.000000e+00 : f32
    %63 = vector.broadcast %cst_18 : f32 to vector<8x128xf32>
    %64 = arith.addf %63, %62 : vector<8x128xf32>
    %65 = arith.divf %63, %64 : vector<8x128xf32>
    %66 = vector.extract_strided_slice %65 {offsets = [0, 0], sizes = [8, 32], strides = [1, 1]} : vector<8x128xf32> to vector<8x32xf32>
    %67 = vector.extract_strided_slice %65 {offsets = [0, 32], sizes = [8, 32], strides = [1, 1]} : vector<8x128xf32> to vector<8x32xf32>
    %68 = vector.extract_strided_slice %65 {offsets = [0, 64], sizes = [8, 32], strides = [1, 1]} : vector<8x128xf32> to vector<8x32xf32>
    %cst_19 = arith.constant 2.000000e+00 : f32
    %69 = vector.broadcast %cst_19 : f32 to vector<8x32xf32>
    %70 = arith.mulf %69, %68 : vector<8x32xf32>
    %cst_20 = arith.constant 1.000000e+00 : f32
    %71 = vector.broadcast %cst_20 : f32 to vector<8x32xf32>
    %72 = arith.subf %70, %71 : vector<8x32xf32>
    %73 = vector.extract_strided_slice %65 {offsets = [0, 96], sizes = [8, 32], strides = [1, 1]} : vector<8x128xf32> to vector<8x32xf32>
    %74 = arith.mulf %67, %50 : vector<8x32xf32>
    %75 = arith.mulf %66, %72 : vector<8x32xf32>
    %76 = arith.addf %74, %75 : vector<8x32xf32>
    %77 = math.tanh %76 : vector<8x32xf32>
    %78 = arith.mulf %73, %77 : vector<8x32xf32>
    %79 = arith.index_cast %56 : i32 to index
    %c0_21 = arith.constant 0 : index
    %80 = vector.load %arg7[%79, %c0_21] : memref<64x32xf32, #tpu.memory_space<vmem>>, vector<8x32xf32>
    tpu.vector_store %arg7[%79, %c0_21], %78 {strides = array<i32>} : memref<64x32xf32, #tpu.memory_space<vmem>>, vector<8x32xf32>,
    %c3_i32 = arith.constant 3 : i32
    %c8_i32_22 = arith.constant 8 : i32
    %81 = arith.muli %c3_i32, %c8_i32_22 : i32
    %82 = tpu.assume_multiple %81, 8 : i32
    %83 = arith.index_cast %82 : i32 to index
    %c0_23 = arith.constant 0 : index
    %84 = vector.load %arg0[%83, %c0_23] : memref<64x128xf32, #tpu.memory_space<vmem>>, vector<8x128xf32>
    %cst_24 = arith.constant dense<0.000000e+00> : vector<8x128xf32>
    %85 = tpu.matmul %78, %0, %cst_24 {dimension_numbers = #tpu.dot_dimension_numbers<[1], [0], [0], [1], [0, 0, 1, 1], [], []>} : vector<8x32xf32>, vector<32x128xf32>, vector<8x128xf32> -> vector<8x128xf32>
    %86 = arith.addf %84, %85 : vector<8x128xf32>
    %87 = arith.negf %86 : vector<8x128xf32>
    %88 = math.exp %87 : vector<8x128xf32>
    %cst_25 = arith.constant 1.000000e+00 : f32
    %89 = vector.broadcast %cst_25 : f32 to vector<8x128xf32>
    %90 = arith.addf %89, %88 : vector<8x128xf32>
    %91 = arith.divf %89, %90 : vector<8x128xf32>
    %92 = vector.extract_strided_slice %91 {offsets = [0, 0], sizes = [8, 32], strides = [1, 1]} : vector<8x128xf32> to vector<8x32xf32>
    %93 = vector.extract_strided_slice %91 {offsets = [0, 32], sizes = [8, 32], strides = [1, 1]} : vector<8x128xf32> to vector<8x32xf32>
    %94 = vector.extract_strided_slice %91 {offsets = [0, 64], sizes = [8, 32], strides = [1, 1]} : vector<8x128xf32> to vector<8x32xf32>
    %cst_26 = arith.constant 2.000000e+00 : f32
    %95 = vector.broadcast %cst_26 : f32 to vector<8x32xf32>
    %96 = arith.mulf %95, %94 : vector<8x32xf32>
    %cst_27 = arith.constant 1.000000e+00 : f32
    %97 = vector.broadcast %cst_27 : f32 to vector<8x32xf32>
    %98 = arith.subf %96, %97 : vector<8x32xf32>
    %99 = vector.extract_strided_slice %91 {offsets = [0, 96], sizes = [8, 32], strides = [1, 1]} : vector<8x128xf32> to vector<8x32xf32>
    %100 = arith.mulf %93, %76 : vector<8x32xf32>
    %101 = arith.mulf %92, %98 : vector<8x32xf32>
    %102 = arith.addf %100, %101 : vector<8x32xf32>
    %103 = math.tanh %102 : vector<8x32xf32>
    %104 = arith.mulf %99, %103 : vector<8x32xf32>
    %105 = arith.index_cast %82 : i32 to index
    %c0_28 = arith.constant 0 : index
    %106 = vector.load %arg7[%105, %c0_28] : memref<64x32xf32, #tpu.memory_space<vmem>>, vector<8x32xf32>
    tpu.vector_store %arg7[%105, %c0_28], %104 {strides = array<i32>} : memref<64x32xf32, #tpu.memory_space<vmem>>, vector<8x32xf32>,
    %c4_i32 = arith.constant 4 : i32
    %c8_i32_29 = arith.constant 8 : i32
    %107 = arith.muli %c4_i32, %c8_i32_29 : i32
    %108 = tpu.assume_multiple %107, 8 : i32
    %109 = arith.index_cast %108 : i32 to index
    %c0_30 = arith.constant 0 : index
    %110 = vector.load %arg0[%109, %c0_30] : memref<64x128xf32, #tpu.memory_space<vmem>>, vector<8x128xf32>
    %cst_31 = arith.constant dense<0.000000e+00> : vector<8x128xf32>
    %111 = tpu.matmul %104, %0, %cst_31 {dimension_numbers = #tpu.dot_dimension_numbers<[1], [0], [0], [1], [0, 0, 1, 1], [], []>} : vector<8x32xf32>, vector<32x128xf32>, vector<8x128xf32> -> vector<8x128xf32>
    %112 = arith.addf %110, %111 : vector<8x128xf32>
    %113 = arith.negf %112 : vector<8x128xf32>
    %114 = math.exp %113 : vector<8x128xf32>
    %cst_32 = arith.constant 1.000000e+00 : f32
    %115 = vector.broadcast %cst_32 : f32 to vector<8x128xf32>
    %116 = arith.addf %115, %114 : vector<8x128xf32>
    %117 = arith.divf %115, %116 : vector<8x128xf32>
    %118 = vector.extract_strided_slice %117 {offsets = [0, 0], sizes = [8, 32], strides = [1, 1]} : vector<8x128xf32> to vector<8x32xf32>
    %119 = vector.extract_strided_slice %117 {offsets = [0, 32], sizes = [8, 32], strides = [1, 1]} : vector<8x128xf32> to vector<8x32xf32>
    %120 = vector.extract_strided_slice %117 {offsets = [0, 64], sizes = [8, 32], strides = [1, 1]} : vector<8x128xf32> to vector<8x32xf32>
    %cst_33 = arith.constant 2.000000e+00 : f32
    %121 = vector.broadcast %cst_33 : f32 to vector<8x32xf32>
    %122 = arith.mulf %121, %120 : vector<8x32xf32>
    %cst_34 = arith.constant 1.000000e+00 : f32
    %123 = vector.broadcast %cst_34 : f32 to vector<8x32xf32>
    %124 = arith.subf %122, %123 : vector<8x32xf32>
    %125 = vector.extract_strided_slice %117 {offsets = [0, 96], sizes = [8, 32], strides = [1, 1]} : vector<8x128xf32> to vector<8x32xf32>
    %126 = arith.mulf %119, %102 : vector<8x32xf32>
    %127 = arith.mulf %118, %124 : vector<8x32xf32>
    %128 = arith.addf %126, %127 : vector<8x32xf32>
    %129 = math.tanh %128 : vector<8x32xf32>
    %130 = arith.mulf %125, %129 : vector<8x32xf32>
    %131 = arith.index_cast %108 : i32 to index
    %c0_35 = arith.constant 0 : index
    %132 = vector.load %arg7[%131, %c0_35] : memref<64x32xf32, #tpu.memory_space<vmem>>, vector<8x32xf32>
    tpu.vector_store %arg7[%131, %c0_35], %130 {strides = array<i32>} : memref<64x32xf32, #tpu.memory_space<vmem>>, vector<8x32xf32>,
    %c5_i32 = arith.constant 5 : i32
    %c8_i32_36 = arith.constant 8 : i32
    %133 = arith.muli %c5_i32, %c8_i32_36 : i32
    %134 = tpu.assume_multiple %133, 8 : i32
    %135 = arith.index_cast %134 : i32 to index
    %c0_37 = arith.constant 0 : index
    %136 = vector.load %arg0[%135, %c0_37] : memref<64x128xf32, #tpu.memory_space<vmem>>, vector<8x128xf32>
    %cst_38 = arith.constant dense<0.000000e+00> : vector<8x128xf32>
    %137 = tpu.matmul %130, %0, %cst_38 {dimension_numbers = #tpu.dot_dimension_numbers<[1], [0], [0], [1], [0, 0, 1, 1], [], []>} : vector<8x32xf32>, vector<32x128xf32>, vector<8x128xf32> -> vector<8x128xf32>
    %138 = arith.addf %136, %137 : vector<8x128xf32>
    %139 = arith.negf %138 : vector<8x128xf32>
    %140 = math.exp %139 : vector<8x128xf32>
    %cst_39 = arith.constant 1.000000e+00 : f32
    %141 = vector.broadcast %cst_39 : f32 to vector<8x128xf32>
    %142 = arith.addf %141, %140 : vector<8x128xf32>
    %143 = arith.divf %141, %142 : vector<8x128xf32>
    %144 = vector.extract_strided_slice %143 {offsets = [0, 0], sizes = [8, 32], strides = [1, 1]} : vector<8x128xf32> to vector<8x32xf32>
    %145 = vector.extract_strided_slice %143 {offsets = [0, 32], sizes = [8, 32], strides = [1, 1]} : vector<8x128xf32> to vector<8x32xf32>
    %146 = vector.extract_strided_slice %143 {offsets = [0, 64], sizes = [8, 32], strides = [1, 1]} : vector<8x128xf32> to vector<8x32xf32>
    %cst_40 = arith.constant 2.000000e+00 : f32
    %147 = vector.broadcast %cst_40 : f32 to vector<8x32xf32>
    %148 = arith.mulf %147, %146 : vector<8x32xf32>
    %cst_41 = arith.constant 1.000000e+00 : f32
    %149 = vector.broadcast %cst_41 : f32 to vector<8x32xf32>
    %150 = arith.subf %148, %149 : vector<8x32xf32>
    %151 = vector.extract_strided_slice %143 {offsets = [0, 96], sizes = [8, 32], strides = [1, 1]} : vector<8x128xf32> to vector<8x32xf32>
    %152 = arith.mulf %145, %128 : vector<8x32xf32>
    %153 = arith.mulf %144, %150 : vector<8x32xf32>
    %154 = arith.addf %152, %153 : vector<8x32xf32>
    %155 = math.tanh %154 : vector<8x32xf32>
    %156 = arith.mulf %151, %155 : vector<8x32xf32>
    %157 = arith.index_cast %134 : i32 to index
    %c0_42 = arith.constant 0 : index
    %158 = vector.load %arg7[%157, %c0_42] : memref<64x32xf32, #tpu.memory_space<vmem>>, vector<8x32xf32>
    tpu.vector_store %arg7[%157, %c0_42], %156 {strides = array<i32>} : memref<64x32xf32, #tpu.memory_space<vmem>>, vector<8x32xf32>,
    %c6_i32 = arith.constant 6 : i32
    %c8_i32_43 = arith.constant 8 : i32
    %159 = arith.muli %c6_i32, %c8_i32_43 : i32
    %160 = tpu.assume_multiple %159, 8 : i32
    %161 = arith.index_cast %160 : i32 to index
    %c0_44 = arith.constant 0 : index
    %162 = vector.load %arg0[%161, %c0_44] : memref<64x128xf32, #tpu.memory_space<vmem>>, vector<8x128xf32>
    %cst_45 = arith.constant dense<0.000000e+00> : vector<8x128xf32>
    %163 = tpu.matmul %156, %0, %cst_45 {dimension_numbers = #tpu.dot_dimension_numbers<[1], [0], [0], [1], [0, 0, 1, 1], [], []>} : vector<8x32xf32>, vector<32x128xf32>, vector<8x128xf32> -> vector<8x128xf32>
    %164 = arith.addf %162, %163 : vector<8x128xf32>
    %165 = arith.negf %164 : vector<8x128xf32>
    %166 = math.exp %165 : vector<8x128xf32>
    %cst_46 = arith.constant 1.000000e+00 : f32
    %167 = vector.broadcast %cst_46 : f32 to vector<8x128xf32>
    %168 = arith.addf %167, %166 : vector<8x128xf32>
    %169 = arith.divf %167, %168 : vector<8x128xf32>
    %170 = vector.extract_strided_slice %169 {offsets = [0, 0], sizes = [8, 32], strides = [1, 1]} : vector<8x128xf32> to vector<8x32xf32>
    %171 = vector.extract_strided_slice %169 {offsets = [0, 32], sizes = [8, 32], strides = [1, 1]} : vector<8x128xf32> to vector<8x32xf32>
    %172 = vector.extract_strided_slice %169 {offsets = [0, 64], sizes = [8, 32], strides = [1, 1]} : vector<8x128xf32> to vector<8x32xf32>
    %cst_47 = arith.constant 2.000000e+00 : f32
    %173 = vector.broadcast %cst_47 : f32 to vector<8x32xf32>
    %174 = arith.mulf %173, %172 : vector<8x32xf32>
    %cst_48 = arith.constant 1.000000e+00 : f32
    %175 = vector.broadcast %cst_48 : f32 to vector<8x32xf32>
    %176 = arith.subf %174, %175 : vector<8x32xf32>
    %177 = vector.extract_strided_slice %169 {offsets = [0, 96], sizes = [8, 32], strides = [1, 1]} : vector<8x128xf32> to vector<8x32xf32>
    %178 = arith.mulf %171, %154 : vector<8x32xf32>
    %179 = arith.mulf %170, %176 : vector<8x32xf32>
    %180 = arith.addf %178, %179 : vector<8x32xf32>
    %181 = math.tanh %180 : vector<8x32xf32>
    %182 = arith.mulf %177, %181 : vector<8x32xf32>
    %183 = arith.index_cast %160 : i32 to index
    %c0_49 = arith.constant 0 : index
    %184 = vector.load %arg7[%183, %c0_49] : memref<64x32xf32, #tpu.memory_space<vmem>>, vector<8x32xf32>
    tpu.vector_store %arg7[%183, %c0_49], %182 {strides = array<i32>} : memref<64x32xf32, #tpu.memory_space<vmem>>, vector<8x32xf32>,
    %c7_i32 = arith.constant 7 : i32
    %c8_i32_50 = arith.constant 8 : i32
    %185 = arith.muli %c7_i32, %c8_i32_50 : i32
    %186 = tpu.assume_multiple %185, 8 : i32
    %187 = arith.index_cast %186 : i32 to index
    %c0_51 = arith.constant 0 : index
    %188 = vector.load %arg0[%187, %c0_51] : memref<64x128xf32, #tpu.memory_space<vmem>>, vector<8x128xf32>
    %cst_52 = arith.constant dense<0.000000e+00> : vector<8x128xf32>
    %189 = tpu.matmul %182, %0, %cst_52 {dimension_numbers = #tpu.dot_dimension_numbers<[1], [0], [0], [1], [0, 0, 1, 1], [], []>} : vector<8x32xf32>, vector<32x128xf32>, vector<8x128xf32> -> vector<8x128xf32>
    %190 = arith.addf %188, %189 : vector<8x128xf32>
    %191 = arith.negf %190 : vector<8x128xf32>
    %192 = math.exp %191 : vector<8x128xf32>
    %cst_53 = arith.constant 1.000000e+00 : f32
    %193 = vector.broadcast %cst_53 : f32 to vector<8x128xf32>
    %194 = arith.addf %193, %192 : vector<8x128xf32>
    %195 = arith.divf %193, %194 : vector<8x128xf32>
    %196 = vector.extract_strided_slice %195 {offsets = [0, 0], sizes = [8, 32], strides = [1, 1]} : vector<8x128xf32> to vector<8x32xf32>
    %197 = vector.extract_strided_slice %195 {offsets = [0, 32], sizes = [8, 32], strides = [1, 1]} : vector<8x128xf32> to vector<8x32xf32>
    %198 = vector.extract_strided_slice %195 {offsets = [0, 64], sizes = [8, 32], strides = [1, 1]} : vector<8x128xf32> to vector<8x32xf32>
    %cst_54 = arith.constant 2.000000e+00 : f32
    %199 = vector.broadcast %cst_54 : f32 to vector<8x32xf32>
    %200 = arith.mulf %199, %198 : vector<8x32xf32>
    %cst_55 = arith.constant 1.000000e+00 : f32
    %201 = vector.broadcast %cst_55 : f32 to vector<8x32xf32>
    %202 = arith.subf %200, %201 : vector<8x32xf32>
    %203 = vector.extract_strided_slice %195 {offsets = [0, 96], sizes = [8, 32], strides = [1, 1]} : vector<8x128xf32> to vector<8x32xf32>
    %204 = arith.mulf %197, %180 : vector<8x32xf32>
    %205 = arith.mulf %196, %202 : vector<8x32xf32>
    %206 = arith.addf %204, %205 : vector<8x32xf32>
    %207 = math.tanh %206 : vector<8x32xf32>
    %208 = arith.mulf %203, %207 : vector<8x32xf32>
    %209 = arith.index_cast %186 : i32 to index
    %c0_56 = arith.constant 0 : index
    %210 = vector.load %arg7[%209, %c0_56] : memref<64x32xf32, #tpu.memory_space<vmem>>, vector<8x32xf32>
    tpu.vector_store %arg7[%209, %c0_56], %208 {strides = array<i32>} : memref<64x32xf32, #tpu.memory_space<vmem>>, vector<8x32xf32>,
    %c8_i32_57 = arith.constant 8 : i32
    %c0_58 = arith.constant 0 : index
    %c0_59 = arith.constant 0 : index
    %c0_60 = arith.constant 0 : index
    %211 = vector.load %arg5[%c0_58, %c0_59, %c0_60] : memref<2x8x32xf32, #tpu.memory_space<vmem>>, vector<1x8x32xf32>
    %212 = vector.shape_cast %211 : vector<1x8x32xf32> to vector<8x32xf32>
    %213 = vector.shape_cast %208 : vector<8x32xf32> to vector<1x8x32xf32>
    tpu.vector_store %arg5[%c0_58, %c0_59, %c0_60], %213 {strides = array<i32>} : memref<2x8x32xf32, #tpu.memory_space<vmem>>, vector<1x8x32xf32>,
    %c0_61 = arith.constant 0 : index
    %c0_62 = arith.constant 0 : index
    %c0_63 = arith.constant 0 : index
    %214 = vector.load %arg6[%c0_61, %c0_62, %c0_63] : memref<2x8x32xf32, #tpu.memory_space<vmem>>, vector<1x8x32xf32>
    %215 = vector.shape_cast %214 : vector<1x8x32xf32> to vector<8x32xf32>
    %216 = vector.shape_cast %206 : vector<8x32xf32> to vector<1x8x32xf32>
    tpu.vector_store %arg6[%c0_61, %c0_62, %c0_63], %216 {strides = array<i32>} : memref<2x8x32xf32, #tpu.memory_space<vmem>>, vector<1x8x32xf32>,
    %c0_64 = arith.constant 0 : index
    %c0_65 = arith.constant 0 : index
    %217 = vector.load %arg3[%c0_64, %c0_65] : memref<32x128xf32, #tpu.memory_space<vmem>>, vector<32x128xf32>
    %c0_66 = arith.constant 0 : index
    %c0_67 = arith.constant 0 : index
    %218 = vector.load %arg7[%c0_66, %c0_67] : memref<64x32xf32, #tpu.memory_space<vmem>>, vector<64x32xf32>
    %cst_68 = arith.constant dense<0.000000e+00> : vector<64x128xf32>
    %219 = tpu.matmul %218, %217, %cst_68 {dimension_numbers = #tpu.dot_dimension_numbers<[1], [0], [0], [1], [0, 0, 1, 1], [], []>} : vector<64x32xf32>, vector<32x128xf32>, vector<64x128xf32> -> vector<64x128xf32>
    %c0_69 = arith.constant 0 : index
    %c0_70 = arith.constant 0 : index
    %220 = vector.load %arg4[%c0_69, %c0_70] : memref<1x128xf32, #tpu.memory_space<vmem>>, vector<1x128xf32>
    %221 = vector.broadcast %220 : vector<1x128xf32> to vector<64x128xf32>
    %222 = arith.addf %219, %221 : vector<64x128xf32>
    %c0_71 = arith.constant 0 : index
    %c0_72 = arith.constant 0 : index
    %223 = vector.load %arg8[%c0_71, %c0_72] : memref<64x128xf32, #tpu.memory_space<vmem>>, vector<64x128xf32>
    tpu.vector_store %arg8[%c0_71, %c0_72], %222 {strides = array<i32>} : memref<64x128xf32, #tpu.memory_space<vmem>>, vector<64x128xf32>,
    %c0_73 = arith.constant 0 : index
    %c0_74 = arith.constant 0 : index
    %224 = vector.load %arg2[%c0_73, %c0_74] : memref<32x128xf32, #tpu.memory_space<vmem>>, vector<32x128xf32>
    %cst_75 = arith.constant 0.000000e+00 : f32
    %225 = vector.broadcast %cst_75 : f32 to vector<8x32xf32>
    %cst_76 = arith.constant 0.000000e+00 : f32
    %226 = vector.broadcast %cst_76 : f32 to vector<8x32xf32>
    %c0_i32_77 = arith.constant 0 : i32
    %c8_i32_78 = arith.constant 8 : i32
    %227 = arith.muli %c0_i32_77, %c8_i32_78 : i32
    %228 = tpu.assume_multiple %227, 8 : i32
    %229 = arith.index_cast %228 : i32 to index
    %c0_79 = arith.constant 0 : index
    %230 = vector.load %arg8[%229, %c0_79] : memref<64x128xf32, #tpu.memory_space<vmem>>, vector<8x128xf32>
    %cst_80 = arith.constant dense<0.000000e+00> : vector<8x128xf32>
    %231 = tpu.matmul %225, %224, %cst_80 {dimension_numbers = #tpu.dot_dimension_numbers<[1], [0], [0], [1], [0, 0, 1, 1], [], []>} : vector<8x32xf32>, vector<32x128xf32>, vector<8x128xf32> -> vector<8x128xf32>
    %232 = arith.addf %230, %231 : vector<8x128xf32>
    %233 = arith.negf %232 : vector<8x128xf32>
    %234 = math.exp %233 : vector<8x128xf32>
    %cst_81 = arith.constant 1.000000e+00 : f32
    %235 = vector.broadcast %cst_81 : f32 to vector<8x128xf32>
    %236 = arith.addf %235, %234 : vector<8x128xf32>
    %237 = arith.divf %235, %236 : vector<8x128xf32>
    %238 = vector.extract_strided_slice %237 {offsets = [0, 0], sizes = [8, 32], strides = [1, 1]} : vector<8x128xf32> to vector<8x32xf32>
    %239 = vector.extract_strided_slice %237 {offsets = [0, 32], sizes = [8, 32], strides = [1, 1]} : vector<8x128xf32> to vector<8x32xf32>
    %240 = vector.extract_strided_slice %237 {offsets = [0, 64], sizes = [8, 32], strides = [1, 1]} : vector<8x128xf32> to vector<8x32xf32>
    %cst_82 = arith.constant 2.000000e+00 : f32
    %241 = vector.broadcast %cst_82 : f32 to vector<8x32xf32>
    %242 = arith.mulf %241, %240 : vector<8x32xf32>
    %cst_83 = arith.constant 1.000000e+00 : f32
    %243 = vector.broadcast %cst_83 : f32 to vector<8x32xf32>
    %244 = arith.subf %242, %243 : vector<8x32xf32>
    %245 = vector.extract_strided_slice %237 {offsets = [0, 96], sizes = [8, 32], strides = [1, 1]} : vector<8x128xf32> to vector<8x32xf32>
    %246 = arith.mulf %239, %226 : vector<8x32xf32>
    %247 = arith.mulf %238, %244 : vector<8x32xf32>
    %248 = arith.addf %246, %247 : vector<8x32xf32>
    %249 = math.tanh %248 : vector<8x32xf32>
    %250 = arith.mulf %245, %249 : vector<8x32xf32>
    %c1_i32_84 = arith.constant 1 : i32
    %c8_i32_85 = arith.constant 8 : i32
    %251 = arith.muli %c1_i32_84, %c8_i32_85 : i32
    %252 = tpu.assume_multiple %251, 8 : i32
    %253 = arith.index_cast %252 : i32 to index
    %c0_86 = arith.constant 0 : index
    %254 = vector.load %arg8[%253, %c0_86] : memref<64x128xf32, #tpu.memory_space<vmem>>, vector<8x128xf32>
    %cst_87 = arith.constant dense<0.000000e+00> : vector<8x128xf32>
    %255 = tpu.matmul %250, %224, %cst_87 {dimension_numbers = #tpu.dot_dimension_numbers<[1], [0], [0], [1], [0, 0, 1, 1], [], []>} : vector<8x32xf32>, vector<32x128xf32>, vector<8x128xf32> -> vector<8x128xf32>
    %256 = arith.addf %254, %255 : vector<8x128xf32>
    %257 = arith.negf %256 : vector<8x128xf32>
    %258 = math.exp %257 : vector<8x128xf32>
    %cst_88 = arith.constant 1.000000e+00 : f32
    %259 = vector.broadcast %cst_88 : f32 to vector<8x128xf32>
    %260 = arith.addf %259, %258 : vector<8x128xf32>
    %261 = arith.divf %259, %260 : vector<8x128xf32>
    %262 = vector.extract_strided_slice %261 {offsets = [0, 0], sizes = [8, 32], strides = [1, 1]} : vector<8x128xf32> to vector<8x32xf32>
    %263 = vector.extract_strided_slice %261 {offsets = [0, 32], sizes = [8, 32], strides = [1, 1]} : vector<8x128xf32> to vector<8x32xf32>
    %264 = vector.extract_strided_slice %261 {offsets = [0, 64], sizes = [8, 32], strides = [1, 1]} : vector<8x128xf32> to vector<8x32xf32>
    %cst_89 = arith.constant 2.000000e+00 : f32
    %265 = vector.broadcast %cst_89 : f32 to vector<8x32xf32>
    %266 = arith.mulf %265, %264 : vector<8x32xf32>
    %cst_90 = arith.constant 1.000000e+00 : f32
    %267 = vector.broadcast %cst_90 : f32 to vector<8x32xf32>
    %268 = arith.subf %266, %267 : vector<8x32xf32>
    %269 = vector.extract_strided_slice %261 {offsets = [0, 96], sizes = [8, 32], strides = [1, 1]} : vector<8x128xf32> to vector<8x32xf32>
    %270 = arith.mulf %263, %248 : vector<8x32xf32>
    %271 = arith.mulf %262, %268 : vector<8x32xf32>
    %272 = arith.addf %270, %271 : vector<8x32xf32>
    %273 = math.tanh %272 : vector<8x32xf32>
    %274 = arith.mulf %269, %273 : vector<8x32xf32>
    %c2_i32_91 = arith.constant 2 : i32
    %c8_i32_92 = arith.constant 8 : i32
    %275 = arith.muli %c2_i32_91, %c8_i32_92 : i32
    %276 = tpu.assume_multiple %275, 8 : i32
    %277 = arith.index_cast %276 : i32 to index
    %c0_93 = arith.constant 0 : index
    %278 = vector.load %arg8[%277, %c0_93] : memref<64x128xf32, #tpu.memory_space<vmem>>, vector<8x128xf32>
    %cst_94 = arith.constant dense<0.000000e+00> : vector<8x128xf32>
    %279 = tpu.matmul %274, %224, %cst_94 {dimension_numbers = #tpu.dot_dimension_numbers<[1], [0], [0], [1], [0, 0, 1, 1], [], []>} : vector<8x32xf32>, vector<32x128xf32>, vector<8x128xf32> -> vector<8x128xf32>
    %280 = arith.addf %278, %279 : vector<8x128xf32>
    %281 = arith.negf %280 : vector<8x128xf32>
    %282 = math.exp %281 : vector<8x128xf32>
    %cst_95 = arith.constant 1.000000e+00 : f32
    %283 = vector.broadcast %cst_95 : f32 to vector<8x128xf32>
    %284 = arith.addf %283, %282 : vector<8x128xf32>
    %285 = arith.divf %283, %284 : vector<8x128xf32>
    %286 = vector.extract_strided_slice %285 {offsets = [0, 0], sizes = [8, 32], strides = [1, 1]} : vector<8x128xf32> to vector<8x32xf32>
    %287 = vector.extract_strided_slice %285 {offsets = [0, 32], sizes = [8, 32], strides = [1, 1]} : vector<8x128xf32> to vector<8x32xf32>
    %288 = vector.extract_strided_slice %285 {offsets = [0, 64], sizes = [8, 32], strides = [1, 1]} : vector<8x128xf32> to vector<8x32xf32>
    %cst_96 = arith.constant 2.000000e+00 : f32
    %289 = vector.broadcast %cst_96 : f32 to vector<8x32xf32>
    %290 = arith.mulf %289, %288 : vector<8x32xf32>
    %cst_97 = arith.constant 1.000000e+00 : f32
    %291 = vector.broadcast %cst_97 : f32 to vector<8x32xf32>
    %292 = arith.subf %290, %291 : vector<8x32xf32>
    %293 = vector.extract_strided_slice %285 {offsets = [0, 96], sizes = [8, 32], strides = [1, 1]} : vector<8x128xf32> to vector<8x32xf32>
    %294 = arith.mulf %287, %272 : vector<8x32xf32>
    %295 = arith.mulf %286, %292 : vector<8x32xf32>
    %296 = arith.addf %294, %295 : vector<8x32xf32>
    %297 = math.tanh %296 : vector<8x32xf32>
    %298 = arith.mulf %293, %297 : vector<8x32xf32>
    %c3_i32_98 = arith.constant 3 : i32
    %c8_i32_99 = arith.constant 8 : i32
    %299 = arith.muli %c3_i32_98, %c8_i32_99 : i32
    %300 = tpu.assume_multiple %299, 8 : i32
    %301 = arith.index_cast %300 : i32 to index
    %c0_100 = arith.constant 0 : index
    %302 = vector.load %arg8[%301, %c0_100] : memref<64x128xf32, #tpu.memory_space<vmem>>, vector<8x128xf32>
    %cst_101 = arith.constant dense<0.000000e+00> : vector<8x128xf32>
    %303 = tpu.matmul %298, %224, %cst_101 {dimension_numbers = #tpu.dot_dimension_numbers<[1], [0], [0], [1], [0, 0, 1, 1], [], []>} : vector<8x32xf32>, vector<32x128xf32>, vector<8x128xf32> -> vector<8x128xf32>
    %304 = arith.addf %302, %303 : vector<8x128xf32>
    %305 = arith.negf %304 : vector<8x128xf32>
    %306 = math.exp %305 : vector<8x128xf32>
    %cst_102 = arith.constant 1.000000e+00 : f32
    %307 = vector.broadcast %cst_102 : f32 to vector<8x128xf32>
    %308 = arith.addf %307, %306 : vector<8x128xf32>
    %309 = arith.divf %307, %308 : vector<8x128xf32>
    %310 = vector.extract_strided_slice %309 {offsets = [0, 0], sizes = [8, 32], strides = [1, 1]} : vector<8x128xf32> to vector<8x32xf32>
    %311 = vector.extract_strided_slice %309 {offsets = [0, 32], sizes = [8, 32], strides = [1, 1]} : vector<8x128xf32> to vector<8x32xf32>
    %312 = vector.extract_strided_slice %309 {offsets = [0, 64], sizes = [8, 32], strides = [1, 1]} : vector<8x128xf32> to vector<8x32xf32>
    %cst_103 = arith.constant 2.000000e+00 : f32
    %313 = vector.broadcast %cst_103 : f32 to vector<8x32xf32>
    %314 = arith.mulf %313, %312 : vector<8x32xf32>
    %cst_104 = arith.constant 1.000000e+00 : f32
    %315 = vector.broadcast %cst_104 : f32 to vector<8x32xf32>
    %316 = arith.subf %314, %315 : vector<8x32xf32>
    %317 = vector.extract_strided_slice %309 {offsets = [0, 96], sizes = [8, 32], strides = [1, 1]} : vector<8x128xf32> to vector<8x32xf32>
    %318 = arith.mulf %311, %296 : vector<8x32xf32>
    %319 = arith.mulf %310, %316 : vector<8x32xf32>
    %320 = arith.addf %318, %319 : vector<8x32xf32>
    %321 = math.tanh %320 : vector<8x32xf32>
    %322 = arith.mulf %317, %321 : vector<8x32xf32>
    %c4_i32_105 = arith.constant 4 : i32
    %c8_i32_106 = arith.constant 8 : i32
    %323 = arith.muli %c4_i32_105, %c8_i32_106 : i32
    %324 = tpu.assume_multiple %323, 8 : i32
    %325 = arith.index_cast %324 : i32 to index
    %c0_107 = arith.constant 0 : index
    %326 = vector.load %arg8[%325, %c0_107] : memref<64x128xf32, #tpu.memory_space<vmem>>, vector<8x128xf32>
    %cst_108 = arith.constant dense<0.000000e+00> : vector<8x128xf32>
    %327 = tpu.matmul %322, %224, %cst_108 {dimension_numbers = #tpu.dot_dimension_numbers<[1], [0], [0], [1], [0, 0, 1, 1], [], []>} : vector<8x32xf32>, vector<32x128xf32>, vector<8x128xf32> -> vector<8x128xf32>
    %328 = arith.addf %326, %327 : vector<8x128xf32>
    %329 = arith.negf %328 : vector<8x128xf32>
    %330 = math.exp %329 : vector<8x128xf32>
    %cst_109 = arith.constant 1.000000e+00 : f32
    %331 = vector.broadcast %cst_109 : f32 to vector<8x128xf32>
    %332 = arith.addf %331, %330 : vector<8x128xf32>
    %333 = arith.divf %331, %332 : vector<8x128xf32>
    %334 = vector.extract_strided_slice %333 {offsets = [0, 0], sizes = [8, 32], strides = [1, 1]} : vector<8x128xf32> to vector<8x32xf32>
    %335 = vector.extract_strided_slice %333 {offsets = [0, 32], sizes = [8, 32], strides = [1, 1]} : vector<8x128xf32> to vector<8x32xf32>
    %336 = vector.extract_strided_slice %333 {offsets = [0, 64], sizes = [8, 32], strides = [1, 1]} : vector<8x128xf32> to vector<8x32xf32>
    %cst_110 = arith.constant 2.000000e+00 : f32
    %337 = vector.broadcast %cst_110 : f32 to vector<8x32xf32>
    %338 = arith.mulf %337, %336 : vector<8x32xf32>
    %cst_111 = arith.constant 1.000000e+00 : f32
    %339 = vector.broadcast %cst_111 : f32 to vector<8x32xf32>
    %340 = arith.subf %338, %339 : vector<8x32xf32>
    %341 = vector.extract_strided_slice %333 {offsets = [0, 96], sizes = [8, 32], strides = [1, 1]} : vector<8x128xf32> to vector<8x32xf32>
    %342 = arith.mulf %335, %320 : vector<8x32xf32>
    %343 = arith.mulf %334, %340 : vector<8x32xf32>
    %344 = arith.addf %342, %343 : vector<8x32xf32>
    %345 = math.tanh %344 : vector<8x32xf32>
    %346 = arith.mulf %341, %345 : vector<8x32xf32>
    %c5_i32_112 = arith.constant 5 : i32
    %c8_i32_113 = arith.constant 8 : i32
    %347 = arith.muli %c5_i32_112, %c8_i32_113 : i32
    %348 = tpu.assume_multiple %347, 8 : i32
    %349 = arith.index_cast %348 : i32 to index
    %c0_114 = arith.constant 0 : index
    %350 = vector.load %arg8[%349, %c0_114] : memref<64x128xf32, #tpu.memory_space<vmem>>, vector<8x128xf32>
    %cst_115 = arith.constant dense<0.000000e+00> : vector<8x128xf32>
    %351 = tpu.matmul %346, %224, %cst_115 {dimension_numbers = #tpu.dot_dimension_numbers<[1], [0], [0], [1], [0, 0, 1, 1], [], []>} : vector<8x32xf32>, vector<32x128xf32>, vector<8x128xf32> -> vector<8x128xf32>
    %352 = arith.addf %350, %351 : vector<8x128xf32>
    %353 = arith.negf %352 : vector<8x128xf32>
    %354 = math.exp %353 : vector<8x128xf32>
    %cst_116 = arith.constant 1.000000e+00 : f32
    %355 = vector.broadcast %cst_116 : f32 to vector<8x128xf32>
    %356 = arith.addf %355, %354 : vector<8x128xf32>
    %357 = arith.divf %355, %356 : vector<8x128xf32>
    %358 = vector.extract_strided_slice %357 {offsets = [0, 0], sizes = [8, 32], strides = [1, 1]} : vector<8x128xf32> to vector<8x32xf32>
    %359 = vector.extract_strided_slice %357 {offsets = [0, 32], sizes = [8, 32], strides = [1, 1]} : vector<8x128xf32> to vector<8x32xf32>
    %360 = vector.extract_strided_slice %357 {offsets = [0, 64], sizes = [8, 32], strides = [1, 1]} : vector<8x128xf32> to vector<8x32xf32>
    %cst_117 = arith.constant 2.000000e+00 : f32
    %361 = vector.broadcast %cst_117 : f32 to vector<8x32xf32>
    %362 = arith.mulf %361, %360 : vector<8x32xf32>
    %cst_118 = arith.constant 1.000000e+00 : f32
    %363 = vector.broadcast %cst_118 : f32 to vector<8x32xf32>
    %364 = arith.subf %362, %363 : vector<8x32xf32>
    %365 = vector.extract_strided_slice %357 {offsets = [0, 96], sizes = [8, 32], strides = [1, 1]} : vector<8x128xf32> to vector<8x32xf32>
    %366 = arith.mulf %359, %344 : vector<8x32xf32>
    %367 = arith.mulf %358, %364 : vector<8x32xf32>
    %368 = arith.addf %366, %367 : vector<8x32xf32>
    %369 = math.tanh %368 : vector<8x32xf32>
    %370 = arith.mulf %365, %369 : vector<8x32xf32>
    %c6_i32_119 = arith.constant 6 : i32
    %c8_i32_120 = arith.constant 8 : i32
    %371 = arith.muli %c6_i32_119, %c8_i32_120 : i32
    %372 = tpu.assume_multiple %371, 8 : i32
    %373 = arith.index_cast %372 : i32 to index
    %c0_121 = arith.constant 0 : index
    %374 = vector.load %arg8[%373, %c0_121] : memref<64x128xf32, #tpu.memory_space<vmem>>, vector<8x128xf32>
    %cst_122 = arith.constant dense<0.000000e+00> : vector<8x128xf32>
    %375 = tpu.matmul %370, %224, %cst_122 {dimension_numbers = #tpu.dot_dimension_numbers<[1], [0], [0], [1], [0, 0, 1, 1], [], []>} : vector<8x32xf32>, vector<32x128xf32>, vector<8x128xf32> -> vector<8x128xf32>
    %376 = arith.addf %374, %375 : vector<8x128xf32>
    %377 = arith.negf %376 : vector<8x128xf32>
    %378 = math.exp %377 : vector<8x128xf32>
    %cst_123 = arith.constant 1.000000e+00 : f32
    %379 = vector.broadcast %cst_123 : f32 to vector<8x128xf32>
    %380 = arith.addf %379, %378 : vector<8x128xf32>
    %381 = arith.divf %379, %380 : vector<8x128xf32>
    %382 = vector.extract_strided_slice %381 {offsets = [0, 0], sizes = [8, 32], strides = [1, 1]} : vector<8x128xf32> to vector<8x32xf32>
    %383 = vector.extract_strided_slice %381 {offsets = [0, 32], sizes = [8, 32], strides = [1, 1]} : vector<8x128xf32> to vector<8x32xf32>
    %384 = vector.extract_strided_slice %381 {offsets = [0, 64], sizes = [8, 32], strides = [1, 1]} : vector<8x128xf32> to vector<8x32xf32>
    %cst_124 = arith.constant 2.000000e+00 : f32
    %385 = vector.broadcast %cst_124 : f32 to vector<8x32xf32>
    %386 = arith.mulf %385, %384 : vector<8x32xf32>
    %cst_125 = arith.constant 1.000000e+00 : f32
    %387 = vector.broadcast %cst_125 : f32 to vector<8x32xf32>
    %388 = arith.subf %386, %387 : vector<8x32xf32>
    %389 = vector.extract_strided_slice %381 {offsets = [0, 96], sizes = [8, 32], strides = [1, 1]} : vector<8x128xf32> to vector<8x32xf32>
    %390 = arith.mulf %383, %368 : vector<8x32xf32>
    %391 = arith.mulf %382, %388 : vector<8x32xf32>
    %392 = arith.addf %390, %391 : vector<8x32xf32>
    %393 = math.tanh %392 : vector<8x32xf32>
    %394 = arith.mulf %389, %393 : vector<8x32xf32>
    %c7_i32_126 = arith.constant 7 : i32
    %c8_i32_127 = arith.constant 8 : i32
    %395 = arith.muli %c7_i32_126, %c8_i32_127 : i32
    %396 = tpu.assume_multiple %395, 8 : i32
    %397 = arith.index_cast %396 : i32 to index
    %c0_128 = arith.constant 0 : index
    %398 = vector.load %arg8[%397, %c0_128] : memref<64x128xf32, #tpu.memory_space<vmem>>, vector<8x128xf32>
    %cst_129 = arith.constant dense<0.000000e+00> : vector<8x128xf32>
    %399 = tpu.matmul %394, %224, %cst_129 {dimension_numbers = #tpu.dot_dimension_numbers<[1], [0], [0], [1], [0, 0, 1, 1], [], []>} : vector<8x32xf32>, vector<32x128xf32>, vector<8x128xf32> -> vector<8x128xf32>
    %400 = arith.addf %398, %399 : vector<8x128xf32>
    %401 = arith.negf %400 : vector<8x128xf32>
    %402 = math.exp %401 : vector<8x128xf32>
    %cst_130 = arith.constant 1.000000e+00 : f32
    %403 = vector.broadcast %cst_130 : f32 to vector<8x128xf32>
    %404 = arith.addf %403, %402 : vector<8x128xf32>
    %405 = arith.divf %403, %404 : vector<8x128xf32>
    %406 = vector.extract_strided_slice %405 {offsets = [0, 0], sizes = [8, 32], strides = [1, 1]} : vector<8x128xf32> to vector<8x32xf32>
    %407 = vector.extract_strided_slice %405 {offsets = [0, 32], sizes = [8, 32], strides = [1, 1]} : vector<8x128xf32> to vector<8x32xf32>
    %408 = vector.extract_strided_slice %405 {offsets = [0, 64], sizes = [8, 32], strides = [1, 1]} : vector<8x128xf32> to vector<8x32xf32>
    %cst_131 = arith.constant 2.000000e+00 : f32
    %409 = vector.broadcast %cst_131 : f32 to vector<8x32xf32>
    %410 = arith.mulf %409, %408 : vector<8x32xf32>
    %cst_132 = arith.constant 1.000000e+00 : f32
    %411 = vector.broadcast %cst_132 : f32 to vector<8x32xf32>
    %412 = arith.subf %410, %411 : vector<8x32xf32>
    %413 = vector.extract_strided_slice %405 {offsets = [0, 96], sizes = [8, 32], strides = [1, 1]} : vector<8x128xf32> to vector<8x32xf32>
    %414 = arith.mulf %407, %392 : vector<8x32xf32>
    %415 = arith.mulf %406, %412 : vector<8x32xf32>
    %416 = arith.addf %414, %415 : vector<8x32xf32>
    %417 = math.tanh %416 : vector<8x32xf32>
    %418 = arith.mulf %413, %417 : vector<8x32xf32>
    %c8_i32_133 = arith.constant 8 : i32
    %c1 = arith.constant 1 : index
    %c0_134 = arith.constant 0 : index
    %c0_135 = arith.constant 0 : index
    %419 = vector.load %arg5[%c1, %c0_134, %c0_135] : memref<2x8x32xf32, #tpu.memory_space<vmem>>, vector<1x8x32xf32>
    %420 = vector.shape_cast %419 : vector<1x8x32xf32> to vector<8x32xf32>
    %421 = vector.shape_cast %418 : vector<8x32xf32> to vector<1x8x32xf32>
    tpu.vector_store %arg5[%c1, %c0_134, %c0_135], %421 {strides = array<i32>} : memref<2x8x32xf32, #tpu.memory_space<vmem>>, vector<1x8x32xf32>,
    %c1_136 = arith.constant 1 : index
    %c0_137 = arith.constant 0 : index
    %c0_138 = arith.constant 0 : index
    %422 = vector.load %arg6[%c1_136, %c0_137, %c0_138] : memref<2x8x32xf32, #tpu.memory_space<vmem>>, vector<1x8x32xf32>
    %423 = vector.shape_cast %422 : vector<1x8x32xf32> to vector<8x32xf32>
    %424 = vector.shape_cast %416 : vector<8x32xf32> to vector<1x8x32xf32>
    tpu.vector_store %arg6[%c1_136, %c0_137, %c0_138], %424 {strides = array<i32>} : memref<2x8x32xf32, #tpu.memory_space<vmem>>, vector<1x8x32xf32>,
    return
  }
}

</mosaic_0001>

<bundles_post_ra>
// kernel: encoder_forward.1
= control target key start
LH: loop header
LB: loop body
LE: loop exit
PB: predicated region body
PF: predicated region fallthrough
CT: control target
= control target key end

     0   :  { %v1387_v4 = vmov 0.0   ;;  %s1388_s30 = smov 64   ;;  %s1389_s7 = smov 32   ;;  %vm27_vm4 = vcmask 261120   ;;  %s1723_s1 = inlined_call_operand.vmem [shape: f32[32,128], index: 1, kind: input, shape index: {}]   ;;  %s1724_s0 = inlined_call_operand.vmem [shape: f32[64,128], index: 0, kind: input, shape index: {}]   ;;  %s1725_s3 = inlined_call_operand.vmem [shape: f32[32,128], index: 3, kind: input, shape index: {}]   ;;  %s1726_s4 = inlined_call_operand.vmem [shape: f32[1,128], index: 4, kind: input, shape index: {}]   ;;  %s1727_s2 = inlined_call_operand.vmem [shape: f32[32,128], index: 2, kind: input, shape index: {}]   ;;  %s1728_s5 = inlined_call_operand.vmem [shape: f32[2,8,32], index: 5, kind: output, shape index: {0}]   ;;  %s1729_s6 = inlined_call_operand.vmem [shape: f32[2,8,32], index: 6, kind: output, shape index: {1}]  }
   0x1   :  { %v1429_v0 = vld [vmem:[%s1723_s1 + $0x18] sm:$0xff]  ;;  %v1434_v1 = vld [vmem:[%s1723_s1 + $0x10] sm:$0xff]  ;;  %v1441_v2 = vld [vmem:[%s1723_s1 + $0x8] sm:$0xff]  ;;  %s1390_s15 = smov 96  }
   0x2   :  { %43 = vmatpush.msra.mxu0 %v1429_v0  ;;  %111 = vmatpush.msra.mxu1 %v1429_v0  ;;  %v1449_v3 = vld [vmem:[%s1723_s1] sm:$0xff]  ;;  %v1221_v32 = vld [vmem:[%s1724_s0 + $0x8] sm:$0xff]  ;;  %v1225_v59 = vld [vmem:[%s1724_s0 + $0x10] sm:$0xff] }
   0x3   :  { %180 = vmatpush.msra.mxu2 %v1429_v0  ;;  %v26_v5 = vld [vmem:[%s1724_s0] sm:$0xff] }
   0x4   :  { %44 = vmatpush.msra.mxu0 %v1434_v1  ;;  %112 = vmatpush.msra.mxu1 %v1434_v1 }
   0x5   :  { %181 = vmatpush.msra.mxu2 %v1434_v1 }
   0x6   :  { %45 = vmatpush.msra.mxu0 %v1441_v2  ;;  %113 = vmatpush.msra.mxu1 %v1441_v2 }
   0x7   :  { %182 = vmatpush.msra.mxu2 %v1441_v2 }
   0x8   :  { %46 = vmatpush.msra.mxu0 %v1449_v3  ;;  %114 = vmatpush.msra.mxu1 %v1449_v3 }
   0x9   :  { %47 = vmatmul.f32.vlgmr.msra.gmra.mxu0 %v1387_v4  ;;  %183 = vmatpush.msra.mxu2 %v1449_v3 }
   0xa   :  { %249 = vmatpush.msrb.mxu1 %v1429_v0  ;;  %318 = vmatpush.msrb.mxu0 %v1429_v0 }
   0xb   :  { %456 = vmatpush.msrb.mxu2 %v1429_v0 }
   0xc   :  { %250 = vmatpush.msrb.mxu1 %v1434_v1  ;;  %319 = vmatpush.msrb.mxu0 %v1434_v1 }
   0xd   :  { %457 = vmatpush.msrb.mxu2 %v1434_v1 }
   0xe   :  { %251 = vmatpush.msrb.mxu1 %v1441_v2  ;;  %320 = vmatpush.msrb.mxu0 %v1441_v2 }
   0xf   :  { %458 = vmatpush.msrb.mxu2 %v1441_v2 }
  0x10   :  { %252 = vmatpush.msrb.mxu1 %v1449_v3  ;;  %321 = vmatpush.msrb.mxu0 %v1449_v3 }
  0x11   :  { %459 = vmatpush.msrb.mxu2 %v1449_v3 }
  0x86   :  { %v48_v6 = vpop.f32.mrf.mxu0 }
  0x87   :  { %v51_v7 = vadd.f32 %v48_v6, %v26_v5 }
  0x89   :  { %v1219_v8 = vmul.f32 -1.442695, %v51_v7 }
  0x8b   :  { %1291 = vpow2.f32 %v1219_v8 }
  0x91   :  { %v1292_v9 = vpop.eup %1291 }
  0x92   :  { %v55_v10 = vadd.f32 1.0, %v1292_v9 }
  0x94   :  { %1293 = vrcp.f32 %v55_v10  ;;  %v67_v14 = vand.u32 2147483648, %v55_v10  ;;  %v65_v16 = vand.u32 2147483647, %v55_v10  ;;  %vm61_vm1 = vweird.f32 %v55_v10 }
  0x96   :  { %v68_v18 = vor.u32 1.1754944e-38, %v67_v14  ;;  %vm66_vm3 = vcmp.eq.f32.partialorder %v65_v16, 8.507059e+37 }
  0x9a   :  { %v1294_v11 = vpop.eup %1293 }
  0x9b   :  { %v57_v12 = vmul.f32 %v1294_v11, %v55_v10  ;;  %vm62_vm0 = vweird.f32 %v1294_v11 }
  0x9c   :  { %vm63_vm2 = vmor %vm61_vm1, %vm62_vm0 }
  0x9d   :  { %v58_v13 = vsub.f32 1.0, %v57_v12 }
  0x9f   :  { %v59_v15 = vmul.f32 %v1294_v11, %v58_v13 }
  0xa1   :  { %v60_v17 = vadd.f32 %v1294_v11, %v59_v15 }
  0xa3   :  { %v64_v19 = vsel %vm63_vm2, %v1294_v11, %v60_v17 }
  0xa4   :  { %v69_v20 = vsel %vm66_vm3, %v68_v18, %v64_v19 }
  0xa5   :  { %v71_v21 = vmul.f32 2.0, %v69_v20  ;;  %v73_v25 = vmul.f32 0.0, %v69_v20 }
  0xa7   :  { %v1220_v22 = vadd.f32 -1.0, %v71_v21 }
  0xa9   :  { %75 = vrot.lane.b32.xlu0 %v1220_v22, %s1388_s30 }
 0x11b   :  { %v76_v23 = vpop.permute.xlu0 %75 }
 0x11c   :  { %v78_v24 = vmul.f32 %v76_v23, %v69_v20  ;;  %v1229_v23 = vld [vmem:[%s1724_s0 + $0x18] sm:$0xff] }
 0x11e   :  { %80 = vrot.lane.b32.xlu0 %v78_v24, %s1389_s7 }
 0x190   :  { %v81_v26 = vpop.permute.xlu0 %80 }
 0x191   :  { %v83_v27 = vadd.f32 %v81_v26, %v73_v25 }
 0x193   :  { %1295 = vtanh.f32 %v83_v27 }
 0x199   :  { %v1296_v28 = vpop.eup %1295 }
 0x19a   :  { %86 = vrot.lane.b32.xlu1 %v1296_v28, %s1388_s30 }
 0x20c   :  { %v87_v29 = vpop.permute.xlu1 %86 }
 0x20d   :  { %v89_v30 = vmul.f32 %v87_v29, %v69_v20 }
 0x20f   :  { %91 = vrot.lane.b32.xlu1 %v89_v30, %s1389_s7 }
 0x281   :  { %v92_v31 = vpop.permute.xlu1 %91 }
 0x282   :  { %94 = vst.msk [vmem:[#allocation2] sm:$0xff] %vm27_vm4, %v92_v31  ;;  %1222 = vmatmul.msk.f32.vlgmr.msra.gmra.mxu1 %vm27_vm4, %v92_v31 }
 0x283   :  { %387 = vmatpush.msra.mxu1 %v1429_v0 }
 0x285   :  { %388 = vmatpush.msra.mxu1 %v1434_v1 }
 0x287   :  { %389 = vmatpush.msra.mxu1 %v1441_v2 }
 0x289   :  { %390 = vmatpush.msra.mxu1 %v1449_v3 }
 0x2ff   :  { %v116_v33 = vpop.f32.mrf.mxu1 }
 0x300   :  { %v119_v34 = vadd.f32 %v1221_v32, %v116_v33 }
 0x302   :  { %v1223_v35 = vmul.f32 -1.442695, %v119_v34 }
 0x304   :  { %1297 = vpow2.f32 %v1223_v35 }
 0x30a   :  { %v1298_v36 = vpop.eup %1297 }
 0x30b   :  { %v123_v37 = vadd.f32 1.0, %v1298_v36 }
 0x30d   :  { %1299 = vrcp.f32 %v123_v37  ;;  %v135_v41 = vand.u32 2147483648, %v123_v37  ;;  %v133_v43 = vand.u32 2147483647, %v123_v37  ;;  %vm129_vm6 = vweird.f32 %v123_v37 }
 0x30f   :  { %v136_v45 = vor.u32 1.1754944e-38, %v135_v41  ;;  %vm134_vm8 = vcmp.eq.f32.partialorder %v133_v43, 8.507059e+37 }
 0x313   :  { %v1300_v38 = vpop.eup %1299 }
 0x314   :  { %v125_v39 = vmul.f32 %v1300_v38, %v123_v37  ;;  %vm130_vm5 = vweird.f32 %v1300_v38 }
 0x315   :  { %vm131_vm7 = vmor %vm129_vm6, %vm130_vm5 }
 0x316   :  { %v126_v40 = vsub.f32 1.0, %v125_v39 }
 0x318   :  { %v127_v42 = vmul.f32 %v1300_v38, %v126_v40 }
 0x31a   :  { %v128_v44 = vadd.f32 %v1300_v38, %v127_v42 }
 0x31c   :  { %v132_v46 = vsel %vm131_vm7, %v1300_v38, %v128_v44 }
 0x31d   :  { %v137_v47 = vsel %vm134_vm8, %v136_v45, %v132_v46 }
 0x31e   :  { %v139_v48 = vmul.f32 2.0, %v137_v47  ;;  %v141_v52 = vmul.f32 %v137_v47, %v83_v27 }
 0x320   :  { %v1224_v49 = vadd.f32 -1.0, %v139_v48 }
 0x322   :  { %143 = vrot.lane.b32.xlu2 %v1224_v49, %s1388_s30  ;;  %v587_v49 = vld [vmem:[%s1725_s3 + $0x18] sm:$0xff] }
 0x323   :  { %636 = vmatpush.msra.mxu0 %v587_v49  ;;  %1282 = vmatpush.msra.mxu3 %v587_v49 }
 0x37c   :  { %v144_v50 = vpop.permute.xlu2 %143 }
 0x37d   :  { %v146_v51 = vmul.f32 %v144_v50, %v137_v47  ;;  %v586_v50 = vld [vmem:[%s1725_s3 + $0x10] sm:$0xff] }
 0x37e   :  { %637 = vmatpush.msra.mxu0 %v586_v50  ;;  %1283 = vmatpush.msra.mxu3 %v586_v50 }
 0x37f   :  { %148 = vrot.lane.b32.xlu2 %v146_v51, %s1389_s7  ;;  %v585_v51 = vld [vmem:[%s1725_s3 + $0x8] sm:$0xff] }
 0x380   :  { %638 = vmatpush.msra.mxu0 %v585_v51  ;;  %1284 = vmatpush.msra.mxu3 %v585_v51 }
 0x3d9   :  { %v149_v53 = vpop.permute.xlu2 %148 }
 0x3da   :  { %v151_v54 = vadd.f32 %v149_v53, %v141_v52  ;;  %v584_v52 = vld [vmem:[%s1725_s3] sm:$0xff] }
 0x3db   :  { %639 = vmatpush.msra.mxu0 %v584_v52  ;;  %1285 = vmatpush.msra.mxu3 %v584_v52 }
 0x3dc   :  { %1301 = vtanh.f32 %v151_v54 }
 0x3e2   :  { %v1302_v55 = vpop.eup %1301 }
 0x3e3   :  { %154 = vrot.lane.b32.xlu0 %v1302_v55, %s1388_s30 }
 0x455   :  { %v155_v56 = vpop.permute.xlu0 %154 }
 0x456   :  { %v157_v57 = vmul.f32 %v155_v56, %v137_v47 }
 0x458   :  { %159 = vrot.lane.b32.xlu1 %v157_v57, %s1389_s7 }
 0x4ca   :  { %v160_v58 = vpop.permute.xlu1 %159 }
 0x4cb   :  { %163 = vst.msk [vmem:[#allocation2 + $0x8] sm:$0xff] %vm27_vm4, %v160_v58  ;;  %1226 = vmatmul.msk.f32.vlgmr.msra.gmra.mxu2 %vm27_vm4, %v160_v58  ;;  %v1233_v58 = vld [vmem:[%s1724_s0 + $0x20] sm:$0xff] }
 0x4cc   :  { %525 = vmatpush.msra.mxu2 %v1429_v0 }
 0x4ce   :  { %526 = vmatpush.msra.mxu2 %v1434_v1 }
 0x4d0   :  { %527 = vmatpush.msra.mxu2 %v1441_v2 }
 0x4d2   :  { %528 = vmatpush.msra.mxu2 %v1449_v3  ;;  %v589_v55 = vld [vmem:[#allocation2 + $0x8] sm:$0xff] }
 0x54e   :  { %v185_v60 = vpop.f32.mrf.mxu2 }
 0x54f   :  { %v188_v61 = vadd.f32 %v1225_v59, %v185_v60 }
 0x551   :  { %v1227_v62 = vmul.f32 -1.442695, %v188_v61 }
 0x553   :  { %1303 = vpow2.f32 %v1227_v62 }
 0x559   :  { %v1304_v63 = vpop.eup %1303 }
 0x55a   :  { %v192_v5 = vadd.f32 1.0, %v1304_v63 }
 0x55c   :  { %1305 = vrcp.f32 %v192_v5  ;;  %v204_v8 = vand.u32 2147483648, %v192_v5  ;;  %v202_v2 = vand.u32 2147483647, %v192_v5  ;;  %vm198_vm10 = vweird.f32 %v192_v5 }
 0x55e   :  { %v205_v3 = vor.u32 1.1754944e-38, %v204_v8  ;;  %vm203_vm12 = vcmp.eq.f32.partialorder %v202_v2, 8.507059e+37 }
 0x562   :  { %v1306_v6 = vpop.eup %1305 }
 0x563   :  { %v194_v7 = vmul.f32 %v1306_v6, %v192_v5  ;;  %vm199_vm9 = vweird.f32 %v1306_v6 }
 0x564   :  { %vm200_vm11 = vmor %vm198_vm10, %vm199_vm9 }
 0x565   :  { %v195_v0 = vsub.f32 1.0, %v194_v7 }
 0x567   :  { %v196_v1 = vmul.f32 %v1306_v6, %v195_v0 }
 0x569   :  { %v197_v9 = vadd.f32 %v1306_v6, %v196_v1 }
 0x56b   :  { %v201_v10 = vsel %vm200_vm11, %v1306_v6, %v197_v9 }
 0x56c   :  { %v206_v11 = vsel %vm203_vm12, %v205_v3, %v201_v10 }
 0x56d   :  { %v208_v12 = vmul.f32 2.0, %v206_v11  ;;  %v210_v16 = vmul.f32 %v206_v11, %v151_v54  ;;  %v588_v54 = vld [vmem:[#allocation2] sm:$0xff] }
 0x56f   :  { %v1228_v13 = vadd.f32 -1.0, %v208_v12 }
 0x571   :  { %212 = vrot.lane.b32.xlu2 %v1228_v13, %s1388_s30 }
 0x5cb   :  { %v213_v14 = vpop.permute.xlu2 %212 }
 0x5cc   :  { %v215_v15 = vmul.f32 %v213_v14, %v206_v11 }
 0x5ce   :  { %217 = vrot.lane.b32.xlu0 %v215_v15, %s1389_s7 }
 0x640   :  { %v218_v17 = vpop.permute.xlu0 %217 }
 0x641   :  { %v220_v18 = vadd.f32 %v218_v17, %v210_v16 }
 0x643   :  { %1307 = vtanh.f32 %v220_v18 }
 0x649   :  { %v1308_v19 = vpop.eup %1307 }
 0x64a   :  { %223 = vrot.lane.b32.xlu1 %v1308_v19, %s1388_s30 }
 0x6bc   :  { %v224_v20 = vpop.permute.xlu1 %223 }
 0x6bd   :  { %v226_v21 = vmul.f32 %v224_v20, %v206_v11 }
 0x6bf   :  { %228 = vrot.lane.b32.xlu2 %v226_v21, %s1389_s7  ;;  %v1544_v21 = vld [vmem:[%s1727_s2 + $0x18] sm:$0xff] }
 0x6c0   :  { %822 = vmatpush.msrb.mxu3 %v1544_v21 }
 0x719   :  { %v229_v22 = vpop.permute.xlu2 %228 }
 0x71a   :  { %232 = vst.msk [vmem:[#allocation2 + $0x10] sm:$0xff] %vm27_vm4, %v229_v22  ;;  %1230 = vmatmul.msk.f32.vlgmr.msrb.gmra.mxu1 %vm27_vm4, %v229_v22  ;;  %v1549_v22 = vld [vmem:[%s1727_s2 + $0x10] sm:$0xff] }
 0x71b   :  { %690 = vmatpush.msrb.mxu1 %v1544_v21  ;;  %823 = vmatpush.msrb.mxu3 %v1549_v22 }
 0x71d   :  { %691 = vmatpush.msrb.mxu1 %v1549_v22 }
 0x721   :  { %v590_v56 = vld [vmem:[#allocation2 + $0x10] sm:$0xff] }
 0x797   :  { %v254_v24 = vpop.f32.mrf.mxu1 }
 0x798   :  { %v257_v25 = vadd.f32 %v1229_v23, %v254_v24  ;;  %v1556_v23 = vld [vmem:[%s1727_s2 + $0x8] sm:$0xff]  ;;  %v1563_v24 = vld [vmem:[%s1727_s2] sm:$0xff] }
 0x799   :  { %692 = vmatpush.msrb.mxu1 %v1556_v23  ;;  %824 = vmatpush.msrb.mxu3 %v1556_v23 }
 0x79a   :  { %v1231_v26 = vmul.f32 -1.442695, %v257_v25 }
 0x79b   :  { %693 = vmatpush.msrb.mxu1 %v1563_v24  ;;  %825 = vmatpush.msrb.mxu3 %v1563_v24 }
 0x79c   :  { %1309 = vpow2.f32 %v1231_v26 }
 0x7a2   :  { %v1310_v27 = vpop.eup %1309 }
 0x7a3   :  { %v261_v28 = vadd.f32 1.0, %v1310_v27 }
 0x7a5   :  { %1311 = vrcp.f32 %v261_v28  ;;  %v273_v32 = vand.u32 2147483648, %v261_v28  ;;  %v271_v34 = vand.u32 2147483647, %v261_v28  ;;  %vm267_vm14 = vweird.f32 %v261_v28 }
 0x7a7   :  { %v274_v36 = vor.u32 1.1754944e-38, %v273_v32  ;;  %vm272_vm0 = vcmp.eq.f32.partialorder %v271_v34, 8.507059e+37 }
 0x7ab   :  { %v1312_v29 = vpop.eup %1311 }
 0x7ac   :  { %v263_v30 = vmul.f32 %v1312_v29, %v261_v28  ;;  %vm268_vm13 = vweird.f32 %v1312_v29 }
 0x7ad   :  { %vm269_vm15 = vmor %vm267_vm14, %vm268_vm13 }
 0x7ae   :  { %v264_v31 = vsub.f32 1.0, %v263_v30 }
 0x7b0   :  { %v265_v33 = vmul.f32 %v1312_v29, %v264_v31 }
 0x7b2   :  { %v266_v35 = vadd.f32 %v1312_v29, %v265_v33 }
 0x7b4   :  { %v270_v37 = vsel %vm269_vm15, %v1312_v29, %v266_v35 }
 0x7b5   :  { %v275_v38 = vsel %vm272_vm0, %v274_v36, %v270_v37 }
 0x7b6   :  { %v277_v39 = vmul.f32 2.0, %v275_v38  ;;  %v279_v43 = vmul.f32 %v275_v38, %v220_v18 }
 0x7b8   :  { %v1232_v40 = vadd.f32 -1.0, %v277_v39 }
 0x7ba   :  { %281 = vrot.lane.b32.xlu0 %v1232_v40, %s1388_s30 }
 0x82c   :  { %v282_v41 = vpop.permute.xlu0 %281 }
 0x82d   :  { %v284_v42 = vmul.f32 %v282_v41, %v275_v38 }
 0x82f   :  { %286 = vrot.lane.b32.xlu1 %v284_v42, %s1389_s7 }
 0x8a1   :  { %v287_v44 = vpop.permute.xlu1 %286 }
 0x8a2   :  { %v289_v45 = vadd.f32 %v287_v44, %v279_v43 }
 0x8a4   :  { %1313 = vtanh.f32 %v289_v45 }
 0x8aa   :  { %v1314_v46 = vpop.eup %1313 }
 0x8ab   :  { %292 = vrot.lane.b32.xlu2 %v1314_v46, %s1388_s30  ;;  %v1593_v46 = vld [vmem:[%s1726_s4] ss:$0 sm:$0xff] }
 0x905   :  { %v293_v47 = vpop.permute.xlu2 %292 }
 0x906   :  { %v295_v48 = vmul.f32 %v293_v47, %v275_v38 }
 0x908   :  { %297 = vrot.lane.b32.xlu0 %v295_v48, %s1389_s7 }
 0x97a   :  { %v298_v53 = vpop.permute.xlu0 %297 }
 0x97b   :  { %301 = vst.msk [vmem:[#allocation2 + $0x18] sm:$0xff] %vm27_vm4, %v298_v53  ;;  %1234 = vmatmul.msk.f32.vlgmr.msrb.gmra.mxu0 %vm27_vm4, %v298_v53 }
 0x982   :  { %v591_v57 = vld [vmem:[#allocation2 + $0x18] sm:$0xff] }
 0x983   :  { %1249 = vmatmul.msk.f32.vlgmr.msra.gmra.mxu0 %vm27_vm4, %v588_v54 }
 0x98b   :  { %1250 = vmatmul.msk.f32.gmra.mxu0 %vm27_vm4, %v589_v55 }
 0x993   :  { %1251 = vmatmul.msk.f32.gmra.mxu0 %vm27_vm4, %v590_v56 }
 0x99b   :  { %1252 = vmatmul.msk.f32.gmra.mxu0 %vm27_vm4, %v591_v57 }
 0x9f8   :  { %v323_v59 = vpop.f32.mrf.mxu0 }
 0x9f9   :  { %v326_v60 = vadd.f32 %v1233_v58, %v323_v59 }
 0x9fb   :  { %v1235_v61 = vmul.f32 -1.442695, %v326_v60 }
 0x9fd   :  { %1315 = vpow2.f32 %v1235_v61 }
 0xa00   :  { %v641_v47 = vpop.f32.mrf.mxu0 }
 0xa01   :  { %v642_v49 = vadd.f32 %v1593_v46, %v641_v47 }
 0xa03   :  { %v1316_v62 = vpop.eup %1315 }
 0xa04   :  { %v330_v63 = vadd.f32 1.0, %v1316_v62 }
 0xa06   :  { %1317 = vrcp.f32 %v330_v63  ;;  %v342_v0 = vand.u32 2147483648, %v330_v63  ;;  %v340_v1 = vand.u32 2147483647, %v330_v63  ;;  %vm336_vm2 = vweird.f32 %v330_v63 }
 0xa08   :  { %v343_v9 = vor.u32 1.1754944e-38, %v342_v0  ;;  %vm341_vm5 = vcmp.eq.f32.partialorder %v340_v1, 8.507059e+37 }
 0xa0c   :  { %v1318_v5 = vpop.eup %1317 }
 0xa0d   :  { %v332_v6 = vmul.f32 %v1318_v5, %v330_v63  ;;  %vm337_vm1 = vweird.f32 %v1318_v5 }
 0xa0e   :  { %vm338_vm3 = vmor %vm336_vm2, %vm337_vm1 }
 0xa0f   :  { %v333_v7 = vsub.f32 1.0, %v332_v6 }
 0xa11   :  { %v334_v8 = vmul.f32 %v1318_v5, %v333_v7 }
 0xa13   :  { %v335_v2 = vadd.f32 %v1318_v5, %v334_v8 }
 0xa15   :  { %v339_v3 = vsel %vm338_vm3, %v1318_v5, %v335_v2 }
 0xa16   :  { %v344_v10 = vsel %vm341_vm5, %v343_v9, %v339_v3 }
 0xa17   :  { %v346_v11 = vmul.f32 2.0, %v344_v10  ;;  %v348_v15 = vmul.f32 %v344_v10, %v289_v45 }
 0xa19   :  { %v1236_v12 = vadd.f32 -1.0, %v346_v11  ;;  %v1241_v11 = vld [vmem:[%s1724_s0 + $0x30] sm:$0xff] }
 0xa1b   :  { %350 = vrot.lane.b32.xlu1 %v1236_v12, %s1388_s30 }
 0xa8d   :  { %v351_v13 = vpop.permute.xlu1 %350 }
 0xa8e   :  { %v353_v14 = vmul.f32 %v351_v13, %v344_v10 }
 0xa90   :  { %355 = vrot.lane.b32.xlu2 %v353_v14, %s1389_s7 }
 0xaea   :  { %v356_v16 = vpop.permute.xlu2 %355 }
 0xaeb   :  { %v1536_v17 = vadd.f32 %v356_v16, %v348_v15 }
 0xaed   :  { %1319 = vtanh.f32 %v1536_v17 }
 0xaf3   :  { %v1320_v18 = vpop.eup %1319 }
 0xaf4   :  { %361 = vrot.lane.b32.xlu0 %v1320_v18, %s1388_s30 }
 0xb66   :  { %v362_v19 = vpop.permute.xlu0 %361 }
 0xb67   :  { %v364_v20 = vmul.f32 %v362_v19, %v344_v10 }
 0xb69   :  { %366 = vrot.lane.b32.xlu1 %v364_v20, %s1389_s7 }
 0xbdb   :  { %v367_v25 = vpop.permute.xlu1 %366 }
 0xbdc   :  { %370 = vst.msk [vmem:[#allocation2 + $0x20] sm:$0xff] %vm27_vm4, %v367_v25  ;;  %1238 = vmatmul.msk.f32.vlgmr.msra.gmra.mxu1 %vm27_vm4, %v367_v25 }
 0xbdd   :  { %888 = vmatpush.msra.mxu1 %v1544_v21 }
 0xbdf   :  { %889 = vmatpush.msra.mxu1 %v1549_v22 }
 0xbe1   :  { %890 = vmatpush.msra.mxu1 %v1556_v23 }
 0xbe3   :  { %v592_v26 = vld [vmem:[#allocation2 + $0x20] sm:$0xff]  ;;  %891 = vmatpush.msra.mxu1 %v1563_v24 }
 0xbe4   :  { %1253 = vmatmul.msk.f32.vlgmr.msra.gmra.mxu3 %vm27_vm4, %v592_v26  ;;  %694 = vmatmul.f32.vlgmr.msrb.gmra.mxu1 %v1387_v4  ;;  %v1237_v4 = vld [vmem:[%s1724_s0 + $0x28] sm:$0xff] }
 0xbe5   :  { %1020 = vmatpush.msra.mxu3 %v1544_v21  ;;  %1086 = vmatpush.msrb.mxu1 %v1544_v21 }
 0xbe7   :  { %1021 = vmatpush.msra.mxu3 %v1549_v22  ;;  %1087 = vmatpush.msrb.mxu1 %v1549_v22 }
 0xbe9   :  { %1022 = vmatpush.msra.mxu3 %v1556_v23  ;;  %1088 = vmatpush.msrb.mxu1 %v1556_v23 }
 0xbeb   :  { %1023 = vmatpush.msra.mxu3 %v1563_v24  ;;  %1089 = vmatpush.msrb.mxu1 %v1563_v24 }
 0xc59   :  { %v392_v27 = vpop.f32.mrf.mxu1 }
 0xc5a   :  { %v395_v28 = vadd.f32 %v1237_v4, %v392_v27 }
 0xc5c   :  { %v1239_v29 = vmul.f32 -1.442695, %v395_v28 }
 0xc5e   :  { %1321 = vpow2.f32 %v1239_v29 }
 0xc61   :  { %v695_v48 = vpop.f32.mrf.mxu1 }
 0xc62   :  { %v698_v50 = vadd.f32 %v695_v48, %v642_v49 }
 0xc64   :  { %v1322_v30 = vpop.eup %1321  ;;  %v1257_v51 = vmul.f32 -1.442695, %v698_v50 }
 0xc65   :  { %v399_v31 = vadd.f32 1.0, %v1322_v30 }
 0xc67   :  { %1323 = vrcp.f32 %v399_v31  ;;  %v411_v35 = vand.u32 2147483648, %v399_v31  ;;  %v409_v37 = vand.u32 2147483647, %v399_v31  ;;  %vm405_vm7 = vweird.f32 %v399_v31 }
 0xc68   :  { %1325 = vpow2.f32 %v1257_v51 }
 0xc69   :  { %v412_v39 = vor.u32 1.1754944e-38, %v411_v35  ;;  %vm410_vm9 = vcmp.eq.f32.partialorder %v409_v37, 8.507059e+37 }
 0xc6d   :  { %v1324_v32 = vpop.eup %1323 }
 0xc6e   :  { %v401_v33 = vmul.f32 %v1324_v32, %v399_v31  ;;  %vm406_vm6 = vweird.f32 %v1324_v32  ;;  %v1326_v52 = vpop.eup %1325 }
 0xc6f   :  { %vm407_vm8 = vmor %vm405_vm7, %vm406_vm6  ;;  %v702_v53 = vadd.f32 1.0, %v1326_v52  ;;  %v1245_v52 = vld [vmem:[%s1724_s0 + $0x38] sm:$0xff] }
 0xc70   :  { %v402_v34 = vsub.f32 1.0, %v401_v33 }
 0xc71   :  { %1327 = vrcp.f32 %v702_v53  ;;  %v714_v62 = vand.u32 2147483648, %v702_v53  ;;  %vm708_vm11 = vweird.f32 %v702_v53  ;;  %v712_v63 = vand.u32 2147483647, %v702_v53 }
 0xc72   :  { %v403_v36 = vmul.f32 %v1324_v32, %v402_v34 }
 0xc73   :  { %v715_v6 = vor.u32 1.1754944e-38, %v714_v62  ;;  %vm713_vm13 = vcmp.eq.f32.partialorder %v712_v63, 8.507059e+37 }
 0xc74   :  { %v404_v38 = vadd.f32 %v1324_v32, %v403_v36 }
 0xc76   :  { %v408_v40 = vsel %vm407_vm8, %v1324_v32, %v404_v38 }
 0xc77   :  { %v413_v41 = vsel %vm410_vm9, %v412_v39, %v408_v40  ;;  %v1328_v54 = vpop.eup %1327 }
 0xc78   :  { %v415_v42 = vmul.f32 2.0, %v413_v41  ;;  %v704_v55 = vmul.f32 %v1328_v54, %v702_v53  ;;  %v417_v58 = vmul.f32 %v413_v41, %v1536_v17  ;;  %vm709_vm10 = vweird.f32 %v1328_v54 }
 0xc79   :  { %vm710_vm12 = vmor %vm708_vm11, %vm709_vm10 }
 0xc7a   :  { %v1240_v43 = vadd.f32 -1.0, %v415_v42  ;;  %v705_v56 = vsub.f32 1.0, %v704_v55 }
 0xc7c   :  { %419 = vrot.lane.b32.xlu2 %v1240_v43, %s1388_s30  ;;  %v706_v57 = vmul.f32 %v1328_v54, %v705_v56  ;;  %v644_v56 = vpop.f32.mrf.mxu0 }
 0xc7e   :  { %v707_v61 = vadd.f32 %v1328_v54, %v706_v57  ;;  %v645_v57 = vadd.f32 %v1593_v46, %v644_v56 }
 0xc80   :  { %v711_v5 = vsel %vm710_vm12, %v1328_v54, %v707_v61 }
 0xc81   :  { %v716_v0 = vsel %vm713_vm13, %v715_v6, %v711_v5 }
 0xc82   :  { %v718_v8 = vmul.f32 2.0, %v716_v0  ;;  %v720_v36 = vmul.f32 0.0, %v716_v0 }
 0xc84   :  { %v1258_v1 = vadd.f32 -1.0, %v718_v8 }
 0xcd6   :  { %v420_v44 = vpop.permute.xlu2 %419 }
 0xcd7   :  { %v422_v45 = vmul.f32 %v420_v44, %v413_v41 }
 0xcd9   :  { %424 = vrot.lane.b32.xlu0 %v422_v45, %s1389_s7 }
 0xd4b   :  { %v425_v59 = vpop.permute.xlu0 %424 }
 0xd4c   :  { %v1597_v60 = vadd.f32 %v425_v59, %v417_v58 }
 0xd4e   :  { %1329 = vtanh.f32 %v1597_v60 }
 0xd54   :  { %v1330_v7 = vpop.eup %1329 }
 0xd55   :  { %430 = vrot.lane.b32.xlu1 %v1330_v7, %s1388_s30 }
 0xd5d   :  { %722 = vrot.lane.b32.xlu1 %v1258_v1, %s1388_s30 }
 0xdc7   :  { %v431_v2 = vpop.permute.xlu1 %430 }
 0xdc8   :  { %v433_v9 = vmul.f32 %v431_v2, %v413_v41 }
 0xdca   :  { %435 = vrot.lane.b32.xlu2 %v433_v9, %s1389_s7 }
 0xdcf   :  { %v723_v32 = vpop.permute.xlu1 %722 }
 0xdd0   :  { %v725_v33 = vmul.f32 %v723_v32, %v716_v0 }
 0xe24   :  { %v436_v3 = vpop.permute.xlu2 %435 }
 0xe25   :  { %439 = vst.msk [vmem:[#allocation2 + $0x28] sm:$0xff] %vm27_vm4, %v436_v3  ;;  %1242 = vmatmul.msk.f32.vlgmr.msrb.gmra.mxu2 %vm27_vm4, %v436_v3 }
 0xe26   :  { %756 = vmatpush.msrb.mxu2 %v1544_v21 }
 0xe28   :  { %757 = vmatpush.msrb.mxu2 %v1549_v22 }
 0xe2a   :  { %758 = vmatpush.msrb.mxu2 %v1556_v23 }
 0xe2c   :  { %v593_v10 = vld [vmem:[#allocation2 + $0x28] sm:$0xff]  ;;  %759 = vmatpush.msrb.mxu2 %v1563_v24 }
 0xe2d   :  { %1254 = vmatmul.msk.f32.gmra.mxu3 %vm27_vm4, %v593_v10 }
 0xea8   :  { %v461_v12 = vpop.f32.mrf.mxu2 }
 0xea9   :  { %v464_v13 = vadd.f32 %v1241_v11, %v461_v12 }
 0xeab   :  { %v1243_v14 = vmul.f32 -1.442695, %v464_v13 }
 0xead   :  { %1331 = vpow2.f32 %v1243_v14 }
 0xeb3   :  { %v1332_v15 = vpop.eup %1331 }
 0xeb4   :  { %v468_v16 = vadd.f32 1.0, %v1332_v15 }
 0xeb6   :  { %1333 = vrcp.f32 %v468_v16  ;;  %v480_v20 = vand.u32 2147483648, %v468_v16  ;;  %v478_v26 = vand.u32 2147483647, %v468_v16  ;;  %vm474_vm15 = vweird.f32 %v468_v16 }
 0xeb8   :  { %v481_v27 = vor.u32 1.1754944e-38, %v480_v20  ;;  %vm479_vm1 = vcmp.eq.f32.partialorder %v478_v26, 8.507059e+37 }
 0xebc   :  { %v1334_v17 = vpop.eup %1333 }
 0xebd   :  { %v470_v18 = vmul.f32 %v1334_v17, %v468_v16  ;;  %vm475_vm14 = vweird.f32 %v1334_v17 }
 0xebe   :  { %vm476_vm0 = vmor %vm474_vm15, %vm475_vm14 }
 0xebf   :  { %v471_v19 = vsub.f32 1.0, %v470_v18 }
 0xec1   :  { %v472_v25 = vmul.f32 %v1334_v17, %v471_v19 }
 0xec3   :  { %v473_v4 = vadd.f32 %v1334_v17, %v472_v25 }
 0xec5   :  { %v477_v28 = vsel %vm476_vm0, %v1334_v17, %v473_v4 }
 0xec6   :  { %v482_v29 = vsel %vm479_vm1, %v481_v27, %v477_v28 }
 0xec7   :  { %v484_v30 = vmul.f32 2.0, %v482_v29  ;;  %v486_v40 = vmul.f32 %v482_v29, %v1597_v60 }
 0xec9   :  { %v1244_v31 = vadd.f32 -1.0, %v484_v30 }
 0xecb   :  { %488 = vrot.lane.b32.xlu0 %v1244_v31, %s1388_s30 }
 0xed3   :  { %727 = vrot.lane.b32.xlu0 %v725_v33, %s1389_s7 }
 0xf3d   :  { %v489_v34 = vpop.permute.xlu0 %488 }
 0xf3e   :  { %v491_v35 = vmul.f32 %v489_v34, %v482_v29 }
 0xf40   :  { %493 = vrot.lane.b32.xlu2 %v491_v35, %s1389_s7 }
 0xf45   :  { %v728_v37 = vpop.permute.xlu0 %727 }
 0xf46   :  { %v1616_v38 = vadd.f32 %v728_v37, %v720_v36 }
 0xf48   :  { %1335 = vtanh.f32 %v1616_v38 }
 0xf4e   :  { %v1336_v39 = vpop.eup %1335 }
 0xf4f   :  { %733 = vrot.lane.b32.xlu2 %v1336_v39, %s1388_s30 }
 0xf9a   :  { %v494_v41 = vpop.permute.xlu2 %493 }
 0xf9b   :  { %v1621_v42 = vadd.f32 %v494_v41, %v486_v40 }
 0xf9d   :  { %1337 = vtanh.f32 %v1621_v42 }
 0xfa3   :  { %v1338_v43 = vpop.eup %1337 }
 0xfa4   :  { %499 = vrot.lane.b32.xlu1 %v1338_v43, %s1388_s30 }
 0xfa9   :  { %v734_v44 = vpop.permute.xlu2 %733 }
 0xfaa   :  { %v736_v45 = vmul.f32 %v734_v44, %v716_v0  ;;  %v1663_v44 = vpop.f32.mrf.mxu3 }
 0xfac   :  { %740 = vrot.lane.b32.xlu1 %v736_v45, %s1389_s7 }
 0xfb2   :  { %v1665_v45 = vpop.f32.mrf.mxu3 }
0x1016   :  { %v500_v47 = vpop.permute.xlu1 %499 }
0x1017   :  { %v502_v48 = vmul.f32 %v500_v47, %v482_v29 }
0x1019   :  { %504 = vrot.lane.b32.xlu0 %v502_v48, %s1389_s7 }
0x101e   :  { %v741_v50 = vpop.permute.xlu1 %740 }
0x108b   :  { %v505_v49 = vpop.permute.xlu0 %504 }
0x108c   :  { %508 = vst.msk [vmem:[#allocation2 + $0x30] sm:$0xff] %vm27_vm4, %v505_v49  ;;  %1246 = vmatmul.msk.f32.vlgmr.msra.gmra.mxu2 %vm27_vm4, %v505_v49  ;;  %v647_v49 = vpop.f32.mrf.mxu0 }
0x108d   :  { %954 = vmatpush.msra.mxu2 %v1544_v21 }
0x108f   :  { %955 = vmatpush.msra.mxu2 %v1549_v22 }
0x1091   :  { %956 = vmatpush.msra.mxu2 %v1556_v23 }
0x1093   :  { %v594_v51 = vld [vmem:[#allocation2 + $0x30] sm:$0xff]  ;;  %957 = vmatpush.msra.mxu2 %v1563_v24 }
0x1094   :  { %1255 = vmatmul.msk.f32.gmra.mxu3 %vm27_vm4, %v594_v51  ;;  %1259 = vmatmul.msk.f32.vlgmr.msrb.gmra.mxu2 %vm27_vm4, %v741_v50  ;;  %v648_v50 = vadd.f32 %v1593_v46, %v647_v49 }
0x1095   :  { %1152 = vmatpush.msrb.mxu2 %v1544_v21 }
0x1097   :  { %1153 = vmatpush.msrb.mxu2 %v1549_v22 }
0x1099   :  { %1154 = vmatpush.msrb.mxu2 %v1556_v23 }
0x109b   :  { %1155 = vmatpush.msrb.mxu2 %v1563_v24 }
0x110f   :  { %v530_v53 = vpop.f32.mrf.mxu2 }
0x1110   :  { %v533_v54 = vadd.f32 %v1245_v52, %v530_v53 }
0x1112   :  { %v1247_v55 = vmul.f32 -1.442695, %v533_v54 }
0x1114   :  { %1339 = vpow2.f32 %v1247_v55 }
0x1117   :  { %v761_v58 = vpop.f32.mrf.mxu2  ;;  %v1667_v47 = vpop.f32.mrf.mxu3 }
0x1118   :  { %v764_v59 = vadd.f32 %v761_v58, %v645_v57 }
0x111a   :  { %v1340_v21 = vpop.eup %1339  ;;  %v1260_v60 = vmul.f32 -1.442695, %v764_v59 }
0x111b   :  { %v537_v22 = vadd.f32 1.0, %v1340_v21 }
0x111c   :  { %1341 = vpow2.f32 %v1260_v60 }
0x111d   :  { %1343 = vrcp.f32 %v537_v22  ;;  %v549_v5 = vand.u32 2147483648, %v537_v22  ;;  %v547_v7 = vand.u32 2147483647, %v537_v22  ;;  %vm543_vm3 = vweird.f32 %v537_v22 }
0x111f   :  { %v550_v1 = vor.u32 1.1754944e-38, %v549_v5  ;;  %vm548_vm6 = vcmp.eq.f32.partialorder %v547_v7, 8.507059e+37 }
0x1122   :  { %v1342_v23 = vpop.eup %1341 }
0x1123   :  { %v1344_v24 = vpop.eup %1343  ;;  %v768_v61 = vadd.f32 1.0, %v1342_v23 }
0x1124   :  { %v539_v62 = vmul.f32 %v1344_v24, %v537_v22  ;;  %vm544_vm2 = vweird.f32 %v1344_v24 }
0x1125   :  { %1345 = vrcp.f32 %v768_v61  ;;  %vm545_vm5 = vmor %vm543_vm3, %vm544_vm2  ;;  %v780_v12 = vand.u32 2147483648, %v768_v61  ;;  %v778_v15 = vand.u32 2147483647, %v768_v61  ;;  %vm774_vm8 = vweird.f32 %v768_v61 }
0x1126   :  { %v540_v63 = vsub.f32 1.0, %v539_v62 }
0x1127   :  { %v781_v17 = vor.u32 1.1754944e-38, %v780_v12  ;;  %vm779_vm10 = vcmp.eq.f32.partialorder %v778_v15, 8.507059e+37 }
0x1128   :  { %v541_v6 = vmul.f32 %v1344_v24, %v540_v63 }
0x112a   :  { %v542_v0 = vadd.f32 %v1344_v24, %v541_v6 }
0x112b   :  { %v1346_v8 = vpop.eup %1345 }
0x112c   :  { %v770_v2 = vmul.f32 %v1346_v8, %v768_v61  ;;  %v546_v9 = vsel %vm545_vm5, %v1344_v24, %v542_v0  ;;  %vm775_vm7 = vweird.f32 %v1346_v8 }
0x112d   :  { %v551_v3 = vsel %vm548_vm6, %v550_v1, %v546_v9  ;;  %vm776_vm9 = vmor %vm774_vm8, %vm775_vm7 }
0x112e   :  { %v771_v10 = vsub.f32 1.0, %v770_v2  ;;  %v553_v11 = vmul.f32 2.0, %v551_v3  ;;  %v555_v29 = vmul.f32 %v551_v3, %v1621_v42 }
0x1130   :  { %v1248_v13 = vadd.f32 -1.0, %v553_v11  ;;  %v772_v14 = vmul.f32 %v1346_v8, %v771_v10  ;;  %v650_v10 = vpop.f32.mrf.mxu0 }
0x1131   :  { %v651_v11 = vadd.f32 %v1593_v46, %v650_v10 }
0x1132   :  { %557 = vrot.lane.b32.xlu2 %v1248_v13, %s1388_s30  ;;  %v773_v16 = vadd.f32 %v1346_v8, %v772_v14 }
0x1134   :  { %v777_v18 = vsel %vm776_vm9, %v1346_v8, %v773_v16 }
0x1135   :  { %v782_v19 = vsel %vm779_vm10, %v781_v17, %v777_v18 }
0x1136   :  { %v784_v20 = vmul.f32 2.0, %v782_v19  ;;  %v786_v32 = vmul.f32 %v782_v19, %v1616_v38 }
0x1138   :  { %v1261_v25 = vadd.f32 -1.0, %v784_v20 }
0x113a   :  { %788 = vrot.lane.b32.xlu0 %v1261_v25, %s1388_s30 }
0x118c   :  { %v558_v26 = vpop.permute.xlu2 %557 }
0x118d   :  { %v560_v4 = vmul.f32 %v558_v26, %v551_v3 }
0x118f   :  { %562 = vrot.lane.b32.xlu1 %v560_v4, %s1389_s7 }
0x11ac   :  { %v789_v27 = vpop.permute.xlu0 %788 }
0x11ad   :  { %v791_v28 = vmul.f32 %v789_v27, %v782_v19 }
0x11af   :  { %793 = vrot.lane.b32.xlu2 %v791_v28, %s1389_s7 }
0x1201   :  { %v563_v30 = vpop.permute.xlu1 %562 }
0x1202   :  { %v1648_v31 = vadd.f32 %v563_v30, %v555_v29 }
0x1204   :  { %1347 = vtanh.f32 %v1648_v31 }
0x1209   :  { %v794_v33 = vpop.permute.xlu2 %793 }
0x120a   :  { %v1348_v34 = vpop.eup %1347  ;;  %v796_v35 = vadd.f32 %v794_v33, %v786_v32 }
0x120b   :  { %568 = vrot.lane.b32.xlu0 %v1348_v34, %s1388_s30 }
0x120c   :  { %1349 = vtanh.f32 %v796_v35 }
0x1212   :  { %v1350_v36 = vpop.eup %1349 }
0x1213   :  { %799 = vrot.lane.b32.xlu1 %v1350_v36, %s1388_s30 }
0x127d   :  { %v569_v37 = vpop.permute.xlu0 %568 }
0x127e   :  { %v571_v39 = vmul.f32 %v569_v37, %v551_v3 }
0x1280   :  { %573 = vrot.lane.b32.xlu2 %v571_v39, %s1389_s7 }
0x1285   :  { %v800_v40 = vpop.permute.xlu1 %799 }
0x1286   :  { %v802_v41 = vmul.f32 %v800_v40, %v782_v19 }
0x1288   :  { %806 = vrot.lane.b32.xlu0 %v802_v41, %s1389_s7 }
0x12da   :  { %v574_v42 = vpop.permute.xlu2 %573 }
0x12db   :  { %577 = vst.msk [vmem:[#allocation2 + $0x38] sm:$0xff] %vm27_vm4, %v574_v42 }
0x12dc   :  { %578 = vst.msk [vmem:[%s1728_s5] sm:$0xff] %vm27_vm4, %v574_v42 }
0x12e2   :  { %v595_v38 = vld [vmem:[#allocation2 + $0x38] sm:$0xff] }
0x12e3   :  { %1256 = vmatmul.msk.f32.gmra.mxu3 %vm27_vm4, %v595_v38  ;;  %v654_v38 = vadd.f32 %v1593_v46, %v1663_v44 }
0x12fa   :  { %v807_v43 = vpop.permute.xlu0 %806 }
0x12fb   :  { %1262 = vmatmul.msk.f32.vlgmr.msrb.gmra.mxu3 %vm27_vm4, %v807_v43 }
0x1366   :  { %v1669_v48 = vpop.f32.mrf.mxu3 }
0x137e   :  { %v827_v51 = vpop.f32.mrf.mxu3 }
0x137f   :  { %v830_v52 = vadd.f32 %v827_v51, %v648_v50 }
0x1381   :  { %v1263_v53 = vmul.f32 -1.442695, %v830_v52 }
0x1383   :  { %1351 = vpow2.f32 %v1263_v53 }
0x1389   :  { %v1352_v54 = vpop.eup %1351 }
0x138a   :  { %v834_v55 = vadd.f32 1.0, %v1352_v54 }
0x138c   :  { %1353 = vrcp.f32 %v834_v55  ;;  %v846_v59 = vand.u32 2147483648, %v834_v55  ;;  %v844_v60 = vand.u32 2147483647, %v834_v55  ;;  %vm840_vm12 = vweird.f32 %v834_v55 }
0x138e   :  { %v847_v23 = vor.u32 1.1754944e-38, %v846_v59  ;;  %vm845_vm14 = vcmp.eq.f32.partialorder %v844_v60, 8.507059e+37 }
0x1392   :  { %v1354_v56 = vpop.eup %1353 }
0x1393   :  { %v836_v57 = vmul.f32 %v1354_v56, %v834_v55  ;;  %vm841_vm11 = vweird.f32 %v1354_v56 }
0x1394   :  { %vm842_vm13 = vmor %vm840_vm12, %vm841_vm11 }
0x1395   :  { %v837_v58 = vsub.f32 1.0, %v836_v57 }
0x1397   :  { %v838_v21 = vmul.f32 %v1354_v56, %v837_v58 }
0x1399   :  { %v839_v22 = vadd.f32 %v1354_v56, %v838_v21 }
0x139b   :  { %v843_v24 = vsel %vm842_vm13, %v1354_v56, %v839_v22 }
0x139c   :  { %v848_v61 = vsel %vm845_vm14, %v847_v23, %v843_v24 }
0x139d   :  { %v850_v62 = vmul.f32 2.0, %v848_v61  ;;  %v852_v7 = vmul.f32 %v848_v61, %v796_v35 }
0x139f   :  { %v1264_v63 = vadd.f32 -1.0, %v850_v62 }
0x13a1   :  { %854 = vrot.lane.b32.xlu1 %v1264_v63, %s1388_s30 }
0x1413   :  { %v855_v5 = vpop.permute.xlu1 %854 }
0x1414   :  { %v857_v6 = vmul.f32 %v855_v5, %v848_v61 }
0x1416   :  { %859 = vrot.lane.b32.xlu2 %v857_v6, %s1389_s7 }
0x1470   :  { %v860_v0 = vpop.permute.xlu2 %859 }
0x1471   :  { %v862_v8 = vadd.f32 %v860_v0, %v852_v7 }
0x1473   :  { %1355 = vtanh.f32 %v862_v8 }
0x1479   :  { %v1356_v1 = vpop.eup %1355 }
0x147a   :  { %865 = vrot.lane.b32.xlu0 %v1356_v1, %s1388_s30  ;;  %v657_v1 = vadd.f32 %v1593_v46, %v1665_v45 }
0x14ec   :  { %v866_v2 = vpop.permute.xlu0 %865 }
0x14ed   :  { %v868_v9 = vmul.f32 %v866_v2, %v848_v61 }
0x14ef   :  { %872 = vrot.lane.b32.xlu1 %v868_v9, %s1389_s7 }
0x1561   :  { %v873_v3 = vpop.permute.xlu1 %872 }
0x1562   :  { %1265 = vmatmul.msk.f32.vlgmr.msra.gmra.mxu1 %vm27_vm4, %v873_v3 }
0x15df   :  { %v893_v12 = vpop.f32.mrf.mxu1 }
0x15e0   :  { %v896_v13 = vadd.f32 %v893_v12, %v651_v11 }
0x15e2   :  { %v1266_v14 = vmul.f32 -1.442695, %v896_v13 }
0x15e4   :  { %1357 = vpow2.f32 %v1266_v14 }
0x15ea   :  { %v1358_v15 = vpop.eup %1357 }
0x15eb   :  { %v900_v16 = vadd.f32 1.0, %v1358_v15 }
0x15ed   :  { %1359 = vrcp.f32 %v900_v16  ;;  %v912_v20 = vand.u32 2147483648, %v900_v16  ;;  %v910_v26 = vand.u32 2147483647, %v900_v16  ;;  %vm906_vm0 = vweird.f32 %v900_v16 }
0x15ef   :  { %v913_v27 = vor.u32 1.1754944e-38, %v912_v20  ;;  %vm911_vm2 = vcmp.eq.f32.partialorder %v910_v26, 8.507059e+37 }
0x15f3   :  { %v1360_v17 = vpop.eup %1359 }
0x15f4   :  { %v902_v18 = vmul.f32 %v1360_v17, %v900_v16  ;;  %vm907_vm15 = vweird.f32 %v1360_v17 }
0x15f5   :  { %vm908_vm1 = vmor %vm906_vm0, %vm907_vm15 }
0x15f6   :  { %v903_v19 = vsub.f32 1.0, %v902_v18 }
0x15f8   :  { %v904_v25 = vmul.f32 %v1360_v17, %v903_v19 }
0x15fa   :  { %v905_v4 = vadd.f32 %v1360_v17, %v904_v25 }
0x15fc   :  { %v909_v28 = vsel %vm908_vm1, %v1360_v17, %v905_v4 }
0x15fd   :  { %v914_v29 = vsel %vm911_vm2, %v913_v27, %v909_v28 }
0x15fe   :  { %v916_v30 = vmul.f32 2.0, %v914_v29  ;;  %v918_v35 = vmul.f32 %v914_v29, %v862_v8 }
0x1600   :  { %v1267_v32 = vadd.f32 -1.0, %v916_v30 }
0x1602   :  { %920 = vrot.lane.b32.xlu2 %v1267_v32, %s1388_s30 }
0x165c   :  { %v921_v33 = vpop.permute.xlu2 %920 }
0x165d   :  { %v923_v34 = vmul.f32 %v921_v33, %v914_v29 }
0x165f   :  { %925 = vrot.lane.b32.xlu0 %v923_v34, %s1389_s7 }
0x16d1   :  { %v926_v36 = vpop.permute.xlu0 %925 }
0x16d2   :  { %v928_v37 = vadd.f32 %v926_v36, %v918_v35  ;;  %v660_v36 = vadd.f32 %v1593_v46, %v1667_v47 }
0x16d4   :  { %1361 = vtanh.f32 %v928_v37 }
0x16da   :  { %v1362_v39 = vpop.eup %1361 }
0x16db   :  { %931 = vrot.lane.b32.xlu1 %v1362_v39, %s1388_s30 }
0x174d   :  { %v932_v40 = vpop.permute.xlu1 %931 }
0x174e   :  { %v934_v41 = vmul.f32 %v932_v40, %v914_v29 }
0x1750   :  { %938 = vrot.lane.b32.xlu2 %v934_v41, %s1389_s7 }
0x17aa   :  { %v939_v42 = vpop.permute.xlu2 %938 }
0x17ab   :  { %1268 = vmatmul.msk.f32.vlgmr.msra.gmra.mxu2 %vm27_vm4, %v939_v42 }
0x182e   :  { %v959_v43 = vpop.f32.mrf.mxu2 }
0x182f   :  { %v962_v49 = vadd.f32 %v959_v43, %v654_v38 }
0x1831   :  { %v1269_v50 = vmul.f32 -1.442695, %v962_v49 }
0x1833   :  { %1363 = vpow2.f32 %v1269_v50 }
0x1839   :  { %v1364_v51 = vpop.eup %1363 }
0x183a   :  { %v966_v52 = vadd.f32 1.0, %v1364_v51 }
0x183c   :  { %1365 = vrcp.f32 %v966_v52  ;;  %v978_v56 = vand.u32 2147483648, %v966_v52  ;;  %v976_v58 = vand.u32 2147483647, %v966_v52  ;;  %vm972_vm5 = vweird.f32 %v966_v52 }
0x183e   :  { %v979_v21 = vor.u32 1.1754944e-38, %v978_v56  ;;  %vm977_vm7 = vcmp.eq.f32.partialorder %v976_v58, 8.507059e+37 }
0x1842   :  { %v1366_v53 = vpop.eup %1365 }
0x1843   :  { %v968_v54 = vmul.f32 %v1366_v53, %v966_v52  ;;  %vm973_vm3 = vweird.f32 %v1366_v53 }
0x1844   :  { %vm974_vm6 = vmor %vm972_vm5, %vm973_vm3 }
0x1845   :  { %v969_v55 = vsub.f32 1.0, %v968_v54 }
0x1847   :  { %v970_v57 = vmul.f32 %v1366_v53, %v969_v55 }
0x1849   :  { %v971_v59 = vadd.f32 %v1366_v53, %v970_v57 }
0x184b   :  { %v975_v60 = vsel %vm974_vm6, %v1366_v53, %v971_v59 }
0x184c   :  { %v980_v44 = vsel %vm977_vm7, %v979_v21, %v975_v60 }
0x184d   :  { %v982_v22 = vmul.f32 2.0, %v980_v44  ;;  %v984_v62 = vmul.f32 %v980_v44, %v928_v37 }
0x184f   :  { %v1270_v23 = vadd.f32 -1.0, %v982_v22 }
0x1851   :  { %986 = vrot.lane.b32.xlu0 %v1270_v23, %s1388_s30 }
0x18c3   :  { %v987_v24 = vpop.permute.xlu0 %986 }
0x18c4   :  { %v989_v61 = vmul.f32 %v987_v24, %v980_v44 }
0x18c6   :  { %991 = vrot.lane.b32.xlu1 %v989_v61, %s1389_s7 }
0x1938   :  { %v992_v63 = vpop.permute.xlu1 %991 }
0x1939   :  { %v994_v5 = vadd.f32 %v992_v63, %v984_v62  ;;  %v663_v62 = vadd.f32 %v1593_v46, %v1669_v48 }
0x193b   :  { %1367 = vtanh.f32 %v994_v5 }
0x1941   :  { %v1368_v6 = vpop.eup %1367 }
0x1942   :  { %997 = vrot.lane.b32.xlu2 %v1368_v6, %s1388_s30 }
0x199c   :  { %v998_v7 = vpop.permute.xlu2 %997 }
0x199d   :  { %v1000_v0 = vmul.f32 %v998_v7, %v980_v44 }
0x199f   :  { %1004 = vrot.lane.b32.xlu0 %v1000_v0, %s1389_s7 }
0x1a11   :  { %v1005_v8 = vpop.permute.xlu0 %1004 }
0x1a12   :  { %1271 = vmatmul.msk.f32.vlgmr.msra.gmra.mxu3 %vm27_vm4, %v1005_v8 }
0x1a95   :  { %v1025_v2 = vpop.f32.mrf.mxu3 }
0x1a96   :  { %v1028_v9 = vadd.f32 %v1025_v2, %v657_v1 }
0x1a98   :  { %v1272_v3 = vmul.f32 -1.442695, %v1028_v9 }
0x1a9a   :  { %1369 = vpow2.f32 %v1272_v3 }
0x1aa0   :  { %v1370_v10 = vpop.eup %1369 }
0x1aa1   :  { %v1032_v11 = vadd.f32 1.0, %v1370_v10 }
0x1aa3   :  { %1371 = vrcp.f32 %v1032_v11  ;;  %v1044_v15 = vand.u32 2147483648, %v1032_v11  ;;  %v1042_v17 = vand.u32 2147483647, %v1032_v11  ;;  %vm1038_vm9 = vweird.f32 %v1032_v11 }
0x1aa5   :  { %v1045_v19 = vor.u32 1.1754944e-38, %v1044_v15  ;;  %vm1043_vm11 = vcmp.eq.f32.partialorder %v1042_v17, 8.507059e+37 }
0x1aa9   :  { %v1372_v12 = vpop.eup %1371 }
0x1aaa   :  { %v1034_v13 = vmul.f32 %v1372_v12, %v1032_v11  ;;  %vm1039_vm8 = vweird.f32 %v1372_v12 }
0x1aab   :  { %vm1040_vm10 = vmor %vm1038_vm9, %vm1039_vm8 }
0x1aac   :  { %v1035_v14 = vsub.f32 1.0, %v1034_v13 }
0x1aae   :  { %v1036_v16 = vmul.f32 %v1372_v12, %v1035_v14 }
0x1ab0   :  { %v1037_v18 = vadd.f32 %v1372_v12, %v1036_v16 }
0x1ab2   :  { %v1041_v20 = vsel %vm1040_vm10, %v1372_v12, %v1037_v18 }
0x1ab3   :  { %v1046_v45 = vsel %vm1043_vm11, %v1045_v19, %v1041_v20 }
0x1ab4   :  { %v1048_v25 = vmul.f32 2.0, %v1046_v45  ;;  %v1050_v28 = vmul.f32 %v1046_v45, %v994_v5 }
0x1ab6   :  { %v1273_v26 = vadd.f32 -1.0, %v1048_v25 }
0x1ab8   :  { %1052 = vrot.lane.b32.xlu1 %v1273_v26, %s1388_s30 }
0x1b2a   :  { %v1053_v4 = vpop.permute.xlu1 %1052 }
0x1b2b   :  { %v1055_v27 = vmul.f32 %v1053_v4, %v1046_v45 }
0x1b2d   :  { %1057 = vrot.lane.b32.xlu2 %v1055_v27, %s1389_s7 }
0x1b87   :  { %v1058_v29 = vpop.permute.xlu2 %1057 }
0x1b88   :  { %v1060_v30 = vadd.f32 %v1058_v29, %v1050_v28 }
0x1b8a   :  { %1373 = vtanh.f32 %v1060_v30 }
0x1b90   :  { %v1374_v32 = vpop.eup %1373 }
0x1b91   :  { %1063 = vrot.lane.b32.xlu0 %v1374_v32, %s1388_s30 }
0x1c03   :  { %v1064_v33 = vpop.permute.xlu0 %1063 }
0x1c04   :  { %v1066_v34 = vmul.f32 %v1064_v33, %v1046_v45 }
0x1c06   :  { %1070 = vrot.lane.b32.xlu1 %v1066_v34, %s1389_s7 }
0x1c78   :  { %v1071_v35 = vpop.permute.xlu1 %1070 }
0x1c79   :  { %1274 = vmatmul.msk.f32.vlgmr.msrb.gmra.mxu1 %vm27_vm4, %v1071_v35 }
0x1cf6   :  { %v1091_v37 = vpop.f32.mrf.mxu1 }
0x1cf7   :  { %v1094_v39 = vadd.f32 %v1091_v37, %v660_v36 }
0x1cf9   :  { %v1275_v40 = vmul.f32 -1.442695, %v1094_v39 }
0x1cfb   :  { %1375 = vpow2.f32 %v1275_v40 }
0x1d01   :  { %v1376_v41 = vpop.eup %1375 }
0x1d02   :  { %v1098_v42 = vadd.f32 1.0, %v1376_v41 }
0x1d04   :  { %1377 = vrcp.f32 %v1098_v42  ;;  %v1110_v50 = vand.u32 2147483648, %v1098_v42  ;;  %v1108_v52 = vand.u32 2147483647, %v1098_v42  ;;  %vm1104_vm13 = vweird.f32 %v1098_v42 }
0x1d06   :  { %v1111_v54 = vor.u32 1.1754944e-38, %v1110_v50  ;;  %vm1109_vm15 = vcmp.eq.f32.partialorder %v1108_v52, 8.507059e+37 }
0x1d0a   :  { %v1378_v38 = vpop.eup %1377 }
0x1d0b   :  { %v1100_v43 = vmul.f32 %v1378_v38, %v1098_v42  ;;  %vm1105_vm12 = vweird.f32 %v1378_v38 }
0x1d0c   :  { %vm1106_vm14 = vmor %vm1104_vm13, %vm1105_vm12 }
0x1d0d   :  { %v1101_v49 = vsub.f32 1.0, %v1100_v43 }
0x1d0f   :  { %v1102_v51 = vmul.f32 %v1378_v38, %v1101_v49 }
0x1d11   :  { %v1103_v53 = vadd.f32 %v1378_v38, %v1102_v51 }
0x1d13   :  { %v1107_v55 = vsel %vm1106_vm14, %v1378_v38, %v1103_v53 }
0x1d14   :  { %v1112_v47 = vsel %vm1109_vm15, %v1111_v54, %v1107_v55 }
0x1d15   :  { %v1114_v56 = vmul.f32 2.0, %v1112_v47  ;;  %v1116_v21 = vmul.f32 %v1112_v47, %v1060_v30 }
0x1d17   :  { %v1276_v57 = vadd.f32 -1.0, %v1114_v56 }
0x1d19   :  { %1118 = vrot.lane.b32.xlu2 %v1276_v57, %s1388_s30 }
0x1d73   :  { %v1119_v58 = vpop.permute.xlu2 %1118 }
0x1d74   :  { %v1121_v59 = vmul.f32 %v1119_v58, %v1112_v47 }
0x1d76   :  { %1123 = vrot.lane.b32.xlu0 %v1121_v59, %s1389_s7 }
0x1de8   :  { %v1124_v60 = vpop.permute.xlu0 %1123 }
0x1de9   :  { %v1126_v44 = vadd.f32 %v1124_v60, %v1116_v21 }
0x1deb   :  { %1379 = vtanh.f32 %v1126_v44 }
0x1df1   :  { %v1380_v22 = vpop.eup %1379 }
0x1df2   :  { %1129 = vrot.lane.b32.xlu1 %v1380_v22, %s1388_s30 }
0x1e64   :  { %v1130_v23 = vpop.permute.xlu1 %1129 }
0x1e65   :  { %v1132_v24 = vmul.f32 %v1130_v23, %v1112_v47 }
0x1e67   :  { %1136 = vrot.lane.b32.xlu2 %v1132_v24, %s1389_s7 }
0x1ec1   :  { %v1137_v61 = vpop.permute.xlu2 %1136 }
0x1ec2   :  { %1277 = vmatmul.msk.f32.vlgmr.msrb.gmra.mxu2 %vm27_vm4, %v1137_v61 }
0x1f45   :  { %v1157_v63 = vpop.f32.mrf.mxu2 }
0x1f46   :  { %v1160_v5 = vadd.f32 %v1157_v63, %v663_v62 }
0x1f48   :  { %v1278_v6 = vmul.f32 -1.442695, %v1160_v5 }
0x1f4a   :  { %1381 = vpow2.f32 %v1278_v6 }
0x1f50   :  { %v1382_v7 = vpop.eup %1381 }
0x1f51   :  { %v1164_v0 = vadd.f32 1.0, %v1382_v7 }
0x1f53   :  { %1383 = vrcp.f32 %v1164_v0  ;;  %v1176_v9 = vand.u32 2147483648, %v1164_v0  ;;  %v1174_v10 = vand.u32 2147483647, %v1164_v0  ;;  %vm1170_vm1 = vweird.f32 %v1164_v0 }
0x1f55   :  { %v1177_v12 = vor.u32 1.1754944e-38, %v1176_v9  ;;  %vm1175_vm3 = vcmp.eq.f32.partialorder %v1174_v10, 8.507059e+37 }
0x1f59   :  { %v1384_v8 = vpop.eup %1383 }
0x1f5a   :  { %v1166_v1 = vmul.f32 %v1384_v8, %v1164_v0  ;;  %vm1171_vm0 = vweird.f32 %v1384_v8 }
0x1f5b   :  { %vm1172_vm2 = vmor %vm1170_vm1, %vm1171_vm0 }
0x1f5c   :  { %v1167_v2 = vsub.f32 1.0, %v1166_v1 }
0x1f5e   :  { %v1168_v3 = vmul.f32 %v1384_v8, %v1167_v2 }
0x1f60   :  { %v1169_v11 = vadd.f32 %v1384_v8, %v1168_v3 }
0x1f62   :  { %v1173_v13 = vsel %vm1172_vm2, %v1384_v8, %v1169_v11 }
0x1f63   :  { %v1178_v46 = vsel %vm1175_vm3, %v1177_v12, %v1173_v13 }
0x1f64   :  { %v1180_v48 = vmul.f32 2.0, %v1178_v46  ;;  %v1182_v18 = vmul.f32 %v1178_v46, %v1126_v44 }
0x1f66   :  { %v1279_v14 = vadd.f32 -1.0, %v1180_v48 }
0x1f68   :  { %1184 = vrot.lane.b32.xlu0 %v1279_v14, %s1388_s30 }
0x1f70   :  { %580 = vrot.lane.b32.xlu0 %v1648_v31, %s1390_s15 }
0x1fda   :  { %v1185_v15 = vpop.permute.xlu0 %1184 }
0x1fdb   :  { %v1187_v16 = vmul.f32 %v1185_v15, %v1178_v46 }
0x1fdd   :  { %1189 = vrot.lane.b32.xlu1 %v1187_v16, %s1389_s7 }
0x1fe2   :  { %v581_v17 = vpop.permute.xlu0 %580 }
0x1fe3   :  { %583 = vst.msk [vmem:[%s1729_s6] sm:$0xff] %vm27_vm4, %v581_v17 }
0x204f   :  { %v1190_v19 = vpop.permute.xlu1 %1189 }
0x2050   :  { %v1192_v20 = vadd.f32 %v1190_v19, %v1182_v18 }
0x2052   :  { %1385 = vtanh.f32 %v1192_v20 }
0x2058   :  { %v1386_v45 = vpop.eup %1385 }
0x2059   :  { %1195 = vrot.lane.b32.xlu2 %v1386_v45, %s1388_s30 }
0x2061   :  { %1206 = vrot.lane.b32.xlu2 %v1192_v20, %s1390_s15 }
0x20b3   :  { %v1196_v25 = vpop.permute.xlu2 %1195 }
0x20b4   :  { %v1198_v31 = vmul.f32 %v1196_v25, %v1178_v46 }
0x20b6   :  { %1200 = vrot.lane.b32.xlu1 %v1198_v31, %s1389_s7 }
0x20bb   :  { %v1207_v26 = vpop.permute.xlu2 %1206 }
0x20bc   :  { %1281 = vst.msk [vmem:[%s1729_s6 + $0x8] sm:$0xff] %vm27_vm4, %v1207_v26 }
0x2128   :  { %v1201_v4 = vpop.permute.xlu1 %1200 }
0x2129   :  { %1280 = vst.msk [vmem:[%s1728_s5 + $0x8] sm:$0xff] %vm27_vm4, %v1201_v4 }

</bundles_post_ra>
